<compile_context>
chip_gen: v7x
topology: tpu7x:2x2x1
jax: 0.10.0
libtpu: 0.0.40
codegen_flags: <defaults>
</compile_context>

<pallas_src>
import jax
import jax.numpy as jnp
from jax.experimental import pallas as pl
from jax.experimental.pallas import tpu as pltpu


# ----- static module configuration (synthetic but deterministic) -------------
STATE_DIM = 4            # columns of s; each HardRuleContinuous reads columns 0..3
ACTION_DIM = 2
HIDDEN = 32              # Controller.hidden_num
RULES_PER_ACTION = 2     # HardRuleContinuous modules per action
NUM_MODULES = ACTION_DIM * RULES_PER_ACTION
NUM_RULES = STATE_DIM + 1            # len(rule_list): 4 input rules + final rule
P_COF = 0.9
ACTION_SCALE = 1.0
BATCH = 8

_BRANCHES = ("w1", "b1", "w2", "b2")
_FC3_OUT = {"w1": HIDDEN * ACTION_DIM, "b1": HIDDEN,
            "w2": HIDDEN * ACTION_DIM, "b2": ACTION_DIM}
OUT3 = sum(_FC3_OUT.values())                      # 162 for (A=2, H=32)
OUT3_PAD = ((OUT3 + 15) // 16) * 16                # sublane-pad (bf16 tile = 16 rows)
CAT_H = len(_BRANCHES) * HIDDEN                    # 128


def _leaky_relu(x):
    # matches torch.nn.functional.leaky_relu default negative_slope=0.01
    return jnp.where(x >= 0, x, 0.01 * x)


# =============================== Pallas kernel ================================
def controller_kernel(s_ref, rule_w_ref, w1_ref, c1_ref, w2_ref, c2_ref,
                      w3_ref, c3_ref, out_ref):
    """Fused Controller forward on a (STATE_DIM, block_b) tile — batch on lanes."""
    sT = s_ref[...]                                   # (C, Bb) f32, batch-dense lanes
    H, A = HIDDEN, ACTION_DIM

    # ---- rule memberships: one sublane row per state column, lane-dense ------
    x0 = sT[0:1, :]
    x1 = sT[1:2, :]
    x2 = sT[2:3, :]
    x3 = sT[3:4, :]
    m0 = 0.5 * (jnp.tanh(0.5 * x0) + 1.0)             # sigmoid (single EUP op)
    m1 = 0.5 * (jnp.tanh(x1) + 1.0)                   # shifted tanh
    m2 = jnp.exp(-x2 * x2)                            # gaussian
    m3 = pl.reciprocal(1.0 + x3 * x3, approx=True)    # cauchy (EUP)
    memb = (m0, m1, m2, m3)                           # each (1, Bb)

    # ---- HardRuleContinuous: w = w_last*min_c(w_c*memb_c); a = tanh(w) -------
    # rule_w scalars come from SMEM and are applied as scalar splats.
    p_rows = []
    for a in range(A):
        p_a = None
        for r in range(RULES_PER_ACTION):
            base = (a * RULES_PER_ACTION + r) * NUM_RULES
            w_m = jnp.minimum(
                jnp.minimum(rule_w_ref[base + 0] * memb[0],
                            rule_w_ref[base + 1] * memb[1]),
                jnp.minimum(rule_w_ref[base + 2] * memb[2],
                            rule_w_ref[base + 3] * memb[3]))
            w_m = rule_w_ref[base + 4] * w_m          # (1, Bb)
            term = w_m * jnp.tanh(w_m)                # w * rule_list[-1](w)
            p_a = term if p_a is None else p_a + term
        p_rows.append(p_a)                            # (1, Bb) per action

    # ---- hyper-network: 3 consolidated matmuls, transposed (W_T @ x_T) -------
    # Weights arrive as bf16 (exactly representable values); upcast → exact f32.
    w1t = w1_ref[...].astype(jnp.float32)             # (4H, C)
    h1 = _leaky_relu(jnp.dot(w1t, sT, preferred_element_type=jnp.float32)
                     + c1_ref[...])                   # (4H, Bb)
    w2t = w2_ref[...].astype(jnp.float32)             # (4H, 4H) block-diag
    h2 = _leaky_relu(jnp.dot(w2t, h1, preferred_element_type=jnp.float32)
                     + c2_ref[...])                   # (4H, Bb)
    w3t = w3_ref[...].astype(jnp.float32)             # (OUT3_PAD, 4H) block-diag
    h3 = jnp.dot(w3t, h2, preferred_element_type=jnp.float32) + c3_ref[...]
    # h3 rows (batch on lanes):
    #   [0,   A*H)         : w1[b, a, h]  at row a*H + h        (action-major)
    #   [A*H, A*H+H)       : b1[b, h]
    #   [A*H+H, 2A*H+H)    : w2[b, h, a]  at row off + a*H + h  (pre-permuted)
    #   [2A*H+H, 2A*H+H+A) : b2[b, a]
    off_b1 = A * H
    off_w2 = A * H + H
    off_b2 = 2 * A * H + H

    # ---- per-sample 2-layer net on p (the two bmms), unrolled over actions ---
    hh = h3[off_b1:off_b1 + H, :]                     # b1, (H, Bb)
    for a in range(A):
        hh = hh + p_rows[a] * h3[a * H:(a + 1) * H, :]
    hh = _leaky_relu(hh)                              # (H, Bb)

    for a in range(A):
        w2a = h3[off_w2 + a * H:off_w2 + (a + 1) * H, :]          # (H, Bb)
        po = (jnp.sum(hh * w2a, axis=0, keepdims=True)
              + h3[off_b2 + a:off_b2 + a + 1, :])                 # (1, Bb)
        pp = ACTION_SCALE * jnp.tanh(po)
        # lane-dense row store, no concat / masked partial stores
        out_ref[a:a + 1, :] = p_rows[a] * P_COF + pp * (1.0 - P_COF)


# ================================= wrapper ====================================
def _pick_block_b(B):
    # Whole batch in one lane-dense block when small/medium (per-row footprint is
    # tens of bytes — trivially within VMEM on v5e/v6e/v7x even at 32K rows).
    # For large batches split into >=2 lane blocks (multiples of 128) so the
    # "parallel" grid axis feeds both TensorCores on v7x.
    if B < 256 or B % 256 != 0:
        return B
    blk = min(B // 2, 32768)
    blk -= blk % 128
    while B % blk:
        blk -= 128
    return blk


def controller_forward(s, fused):
    """s: (B, STATE_DIM) f32; fused: dict from fuse_params(). Returns (B, A) f32."""
    B, C = s.shape
    sT = s.T                              # layout plumbing stays in the wrapper
    block_b = _pick_block_b(B)
    grid = (B // block_b,)

    def full(arr):
        nd = arr.ndim
        return pl.BlockSpec(arr.shape, lambda i, _nd=nd: (0,) * _nd)

    outT = pl.pallas_call(
        controller_kernel,
        out_shape=jax.ShapeDtypeStruct((ACTION_DIM, B), jnp.float32),
        grid=grid,
        in_specs=[
            pl.BlockSpec((C, block_b), lambda i: (0, i)),            # s_T tile
            pl.BlockSpec(memory_space=pltpu.MemorySpace.SMEM),       # rule scalars
            full(fused["W1T"]), full(fused["c1T"]),                  # (4H,C) bf16,(4H,1)
            full(fused["W2T"]), full(fused["c2T"]),                  # (4H,4H) bf16,(4H,1)
            full(fused["W3T"]), full(fused["c3T"]),                  # (176,4H) bf16,(176,1)
        ],
        out_specs=pl.BlockSpec((ACTION_DIM, block_b), lambda i: (0, i)),
        compiler_params=pltpu.CompilerParams(
            dimension_semantics=("parallel",),   # shard batch blocks across TCs (v7x)
        ),
    )(sT, fused["rule_w"], fused["W1T"], fused["c1T"],
      fused["W2T"], fused["c2T"], fused["W3T"], fused["c3T"])
    return outT.T                          # (B, A)


# ========================= parameters & layout plumbing =======================
def make_params(key):
    """Deterministic synthetic Controller parameters (JAX (in,out) convention).

    Linear weights are rounded to bf16-representable values so the kernel can
    DMA them as bf16 with *zero* numerical difference vs. the f32 reference."""
    keys = iter(jax.random.split(key, 32))

    def linear(fan_in, fan_out):
        w = jax.random.normal(next(keys), (fan_in, fan_out), jnp.float32) / (fan_in ** 0.5)
        w = w.astype(jnp.bfloat16).astype(jnp.float32)   # bf16-exact weights
        b = 0.1 * jax.random.normal(next(keys), (fan_out,), jnp.float32)
        return w, b

    params = {}
    for br in _BRANCHES:
        params[br] = {
            "fc1": linear(STATE_DIM, HIDDEN),
            "fc2": linear(HIDDEN, HIDDEN),
            "fc3": linear(HIDDEN, _FC3_OUT[br]),
        }
    # HardRuleContinuous w_list params (init ones in the module; perturbed here so
    # the test exercises non-trivial scaling).
    params["rule_w"] = 1.0 + 0.25 * jax.random.normal(
        next(keys), (NUM_MODULES, NUM_RULES), jnp.float32)
    return params


def fuse_params(params):
    """Pack the 12 Linear layers into 3 transposed, bf16 matmul operands."""
    H, A = HIDDEN, ACTION_DIM
    # permutation turning the w2_fc3 output from (H, A)-interleaved columns into
    # action-major blocks so the kernel uses contiguous sublane slices.
    perm = jnp.arange(H * A).reshape(H, A).T.reshape(-1)

    def fc3_wb(br):
        w, b = params[br]["fc3"]
        return (w[:, perm], b[perm]) if br == "w2" else (w, b)

    def block_diag(blocks):
        rows = sum(b.shape[0] for b in blocks)
        cols = sum(b.shape[1] for b in blocks)
        out = jnp.zeros((rows, cols), jnp.float32)
        r = c = 0
        for blk in blocks:
            out = out.at[r:r + blk.shape[0], c:c + blk.shape[1]].set(blk)
            r += blk.shape[0]
            c += blk.shape[1]
        return out

    W1 = jnp.concatenate([params[br]["fc1"][0] for br in _BRANCHES], axis=1)
    c1 = jnp.concatenate([params[br]["fc1"][1] for br in _BRANCHES])
    W2 = block_diag([params[br]["fc2"][0] for br in _BRANCHES])
    c2 = jnp.concatenate([params[br]["fc2"][1] for br in _BRANCHES])
    fc3 = [fc3_wb(br) for br in _BRANCHES]
    W3 = block_diag([w for w, _ in fc3])
    c3 = jnp.concatenate([b for _, b in fc3])
    pad = OUT3_PAD - OUT3
    W3 = jnp.pad(W3, ((0, 0), (0, pad)))
    c3 = jnp.pad(c3, (0, pad))

    return {
        "rule_w": params["rule_w"].reshape(-1),               # (M*NUM_RULES,) SMEM
        "W1T": W1.T.astype(jnp.bfloat16), "c1T": c1[:, None],  # (4H,C), (4H,1)
        "W2T": W2.T.astype(jnp.bfloat16), "c2T": c2[:, None],  # (4H,4H), (4H,1)
        "W3T": W3.T.astype(jnp.bfloat16), "c3T": c3[:, None],  # (176,4H), (176,1)
    }


# ============================ pure-JAX reference ==============================
_INPUT_RULES = (
    lambda x: 1.0 / (1.0 + jnp.exp(-x)),          # sigmoid
    lambda x: 0.5 * (jnp.tanh(x) + 1.0),          # shifted tanh
    lambda x: jnp.exp(-x * x),                    # gaussian
    lambda x: 1.0 / (1.0 + x * x),                # cauchy
)
_FINAL_RULE = jnp.tanh


def controller_reference(s, params):
    H, A = HIDDEN, ACTION_DIM
    p_cols = []
    for a_idx in range(ACTION_DIM):
        w_vals, a_vals = [], []
        for r in range(RULES_PER_ACTION):
            m = a_idx * RULES_PER_ACTION + r
            wl = params["rule_w"][m]
            cols = [wl[c] * _INPUT_RULES[c](s[:, c:c + 1]) for c in range(NUM_RULES - 1)]
            w = wl[NUM_RULES - 1] * jnp.min(jnp.concatenate(cols, 1), axis=1, keepdims=True)
            w_vals.append(w)
            a_vals.append(_FINAL_RULE(w))
        wcat = jnp.concatenate(w_vals, 1)
        acat = jnp.concatenate(a_vals, 1)
        p_cols.append(jnp.sum(wcat * acat, axis=1, keepdims=True))
    p = jnp.concatenate(p_cols, 1)

    def branch(br, x):
        (w1, b1), (w2, b2), (w3, b3) = (params[br]["fc1"], params[br]["fc2"],
                                        params[br]["fc3"])
        return _leaky_relu(_leaky_relu(x @ w1 + b1) @ w2 + b2) @ w3 + b3

    w1 = branch("w1", s).reshape(-1, A, H)
    b1 = branch("b1", s).reshape(-1, 1, H)
    w2 = branch("w2", s).reshape(-1, H, A)
    b2 = branch("b2", s).reshape(-1, 1, A)

    pm = p.reshape(-1, 1, A)
    hh = _leaky_relu(jnp.einsum("bij,bjk->bik", pm, w1) + b1)
    p_out = (jnp.einsum("bij,bjk->bik", hh, w2) + b2).reshape(-1, A)
    p_prime = ACTION_SCALE * jnp.tanh(p_out)
    return p * P_COF + p_prime * (1.0 - P_COF)


# ==================================== main ====================================
if __name__ == "__main__":
    key = jax.random.PRNGKey(0)
    k_s, k_p = jax.random.split(key)
    s = jax.random.normal(k_s, (BATCH, STATE_DIM), dtype=jnp.float32)
    params = make_params(k_p)
    fused = fuse_params(params)

    out = controller_forward(s, fused)
    out = jax.block_until_ready(out)

    ref = controller_reference(s, params)
    assert out.shape == (BATCH, ACTION_DIM)
    # pl.reciprocal(approx=True) on the cauchy rule -> ~1e-3-level deviations expected
    assert jnp.allclose(out, ref, atol=5e-3, rtol=5e-3), \
        "controller output mismatch vs pure-JAX reference"

    print("KERNEL_OK")
</pallas_src>

<mosaic_0001>
module attributes {stable_mosaic.version = 11 : i64} {
  func.func @controller_kernel(%arg0: i32, %arg1: memref<4x8xf32, #tpu.memory_space<vmem>>, %arg2: memref<20xf32, #tpu.memory_space<smem>>, %arg3: memref<128x4xbf16, #tpu.memory_space<vmem>>, %arg4: memref<128x1xf32, #tpu.memory_space<vmem>>, %arg5: memref<128x128xbf16, #tpu.memory_space<vmem>>, %arg6: memref<128x1xf32, #tpu.memory_space<vmem>>, %arg7: memref<176x128xbf16, #tpu.memory_space<vmem>>, %arg8: memref<176x1xf32, #tpu.memory_space<vmem>>, %arg9: memref<2x8xf32, #tpu.memory_space<vmem>>) attributes {dimension_semantics = [#tpu.dimension_semantics<parallel>], iteration_bounds = array<i64: 1>, scalar_prefetch = 0 : i64, scratch_operands = 0 : i64, tpu.core_type = #tpu.core_type<tc>, window_params = [{transform_indices = @transform_0, window_bounds = array<i64: 4, 8>}, {transform_indices = @transform_1, window_bounds = array<i64: 20>}, {pipeline_mode = #tpu.pipeline_mode<synchronous>, transform_indices = @transform_2, window_bounds = array<i64: 128, 4>}, {pipeline_mode = #tpu.pipeline_mode<synchronous>, transform_indices = @transform_3, window_bounds = array<i64: 128, 1>}, {pipeline_mode = #tpu.pipeline_mode<synchronous>, transform_indices = @transform_4, window_bounds = array<i64: 128, 128>}, {pipeline_mode = #tpu.pipeline_mode<synchronous>, transform_indices = @transform_5, window_bounds = array<i64: 128, 1>}, {pipeline_mode = #tpu.pipeline_mode<synchronous>, transform_indices = @transform_6, window_bounds = array<i64: 176, 128>}, {pipeline_mode = #tpu.pipeline_mode<synchronous>, transform_indices = @transform_7, window_bounds = array<i64: 176, 1>}, {transform_indices = @transform_8, window_bounds = array<i64: 2, 8>}]} {
    %c0 = arith.constant 0 : index
    %c0_0 = arith.constant 0 : index
    %0 = vector.load %arg1[%c0, %c0_0] : memref<4x8xf32, #tpu.memory_space<vmem>>, vector<4x8xf32>
    %1 = vector.extract_strided_slice %0 {offsets = [0, 0], sizes = [1, 8], strides = [1, 1]} : vector<4x8xf32> to vector<1x8xf32>
    %2 = vector.extract_strided_slice %0 {offsets = [1, 0], sizes = [1, 8], strides = [1, 1]} : vector<4x8xf32> to vector<1x8xf32>
    %3 = vector.extract_strided_slice %0 {offsets = [2, 0], sizes = [1, 8], strides = [1, 1]} : vector<4x8xf32> to vector<1x8xf32>
    %4 = vector.extract_strided_slice %0 {offsets = [3, 0], sizes = [1, 8], strides = [1, 1]} : vector<4x8xf32> to vector<1x8xf32>
    %cst = arith.constant 5.000000e-01 : f32
    %5 = vector.broadcast %cst : f32 to vector<1x8xf32>
    %6 = arith.mulf %5, %1 : vector<1x8xf32>
    %7 = math.tanh %6 : vector<1x8xf32>
    %cst_1 = arith.constant 1.000000e+00 : f32
    %8 = vector.broadcast %cst_1 : f32 to vector<1x8xf32>
    %9 = arith.addf %7, %8 : vector<1x8xf32>
    %cst_2 = arith.constant 5.000000e-01 : f32
    %10 = vector.broadcast %cst_2 : f32 to vector<1x8xf32>
    %11 = arith.mulf %10, %9 : vector<1x8xf32>
    %12 = math.tanh %2 : vector<1x8xf32>
    %cst_3 = arith.constant 1.000000e+00 : f32
    %13 = vector.broadcast %cst_3 : f32 to vector<1x8xf32>
    %14 = arith.addf %12, %13 : vector<1x8xf32>
    %cst_4 = arith.constant 5.000000e-01 : f32
    %15 = vector.broadcast %cst_4 : f32 to vector<1x8xf32>
    %16 = arith.mulf %15, %14 : vector<1x8xf32>
    %cst_5 = arith.constant 0.000000e+00 : f32
    %17 = vector.broadcast %cst_5 : f32 to vector<1x8xf32>
    %18 = arith.subf %17, %3 : vector<1x8xf32>
    %19 = arith.mulf %18, %3 : vector<1x8xf32>
    %20 = math.exp %19 : vector<1x8xf32>
    %21 = arith.mulf %4, %4 : vector<1x8xf32>
    %cst_6 = arith.constant 1.000000e+00 : f32
    %22 = vector.broadcast %cst_6 : f32 to vector<1x8xf32>
    %23 = arith.addf %22, %21 : vector<1x8xf32>
    %24 = tpu.reciprocal %23 {approx = true} : vector<1x8xf32> -> vector<1x8xf32>
    %c0_7 = arith.constant 0 : index
    %25 = memref.load %arg2[%c0_7] : memref<20xf32, #tpu.memory_space<smem>>
    %26 = vector.broadcast %25 : f32 to vector<1x8xf32>
    %27 = arith.mulf %26, %11 : vector<1x8xf32>
    %c1 = arith.constant 1 : index
    %28 = memref.load %arg2[%c1] : memref<20xf32, #tpu.memory_space<smem>>
    %29 = vector.broadcast %28 : f32 to vector<1x8xf32>
    %30 = arith.mulf %29, %16 : vector<1x8xf32>
    %31 = arith.minimumf %27, %30 : vector<1x8xf32>
    %c2 = arith.constant 2 : index
    %32 = memref.load %arg2[%c2] : memref<20xf32, #tpu.memory_space<smem>>
    %33 = vector.broadcast %32 : f32 to vector<1x8xf32>
    %34 = arith.mulf %33, %20 : vector<1x8xf32>
    %c3 = arith.constant 3 : index
    %35 = memref.load %arg2[%c3] : memref<20xf32, #tpu.memory_space<smem>>
    %36 = vector.broadcast %35 : f32 to vector<1x8xf32>
    %37 = arith.mulf %36, %24 : vector<1x8xf32>
    %38 = arith.minimumf %34, %37 : vector<1x8xf32>
    %39 = arith.minimumf %31, %38 : vector<1x8xf32>
    %c4 = arith.constant 4 : index
    %40 = memref.load %arg2[%c4] : memref<20xf32, #tpu.memory_space<smem>>
    %41 = vector.broadcast %40 : f32 to vector<1x8xf32>
    %42 = arith.mulf %41, %39 : vector<1x8xf32>
    %43 = math.tanh %42 : vector<1x8xf32>
    %44 = arith.mulf %42, %43 : vector<1x8xf32>
    %c5 = arith.constant 5 : index
    %45 = memref.load %arg2[%c5] : memref<20xf32, #tpu.memory_space<smem>>
    %46 = vector.broadcast %45 : f32 to vector<1x8xf32>
    %47 = arith.mulf %46, %11 : vector<1x8xf32>
    %c6 = arith.constant 6 : index
    %48 = memref.load %arg2[%c6] : memref<20xf32, #tpu.memory_space<smem>>
    %49 = vector.broadcast %48 : f32 to vector<1x8xf32>
    %50 = arith.mulf %49, %16 : vector<1x8xf32>
    %51 = arith.minimumf %47, %50 : vector<1x8xf32>
    %c7 = arith.constant 7 : index
    %52 = memref.load %arg2[%c7] : memref<20xf32, #tpu.memory_space<smem>>
    %53 = vector.broadcast %52 : f32 to vector<1x8xf32>
    %54 = arith.mulf %53, %20 : vector<1x8xf32>
    %c8 = arith.constant 8 : index
    %55 = memref.load %arg2[%c8] : memref<20xf32, #tpu.memory_space<smem>>
    %56 = vector.broadcast %55 : f32 to vector<1x8xf32>
    %57 = arith.mulf %56, %24 : vector<1x8xf32>
    %58 = arith.minimumf %54, %57 : vector<1x8xf32>
    %59 = arith.minimumf %51, %58 : vector<1x8xf32>
    %c9 = arith.constant 9 : index
    %60 = memref.load %arg2[%c9] : memref<20xf32, #tpu.memory_space<smem>>
    %61 = vector.broadcast %60 : f32 to vector<1x8xf32>
    %62 = arith.mulf %61, %59 : vector<1x8xf32>
    %63 = math.tanh %62 : vector<1x8xf32>
    %64 = arith.mulf %62, %63 : vector<1x8xf32>
    %65 = arith.addf %44, %64 : vector<1x8xf32>
    %c10 = arith.constant 10 : index
    %66 = memref.load %arg2[%c10] : memref<20xf32, #tpu.memory_space<smem>>
    %67 = vector.broadcast %66 : f32 to vector<1x8xf32>
    %68 = arith.mulf %67, %11 : vector<1x8xf32>
    %c11 = arith.constant 11 : index
    %69 = memref.load %arg2[%c11] : memref<20xf32, #tpu.memory_space<smem>>
    %70 = vector.broadcast %69 : f32 to vector<1x8xf32>
    %71 = arith.mulf %70, %16 : vector<1x8xf32>
    %72 = arith.minimumf %68, %71 : vector<1x8xf32>
    %c12 = arith.constant 12 : index
    %73 = memref.load %arg2[%c12] : memref<20xf32, #tpu.memory_space<smem>>
    %74 = vector.broadcast %73 : f32 to vector<1x8xf32>
    %75 = arith.mulf %74, %20 : vector<1x8xf32>
    %c13 = arith.constant 13 : index
    %76 = memref.load %arg2[%c13] : memref<20xf32, #tpu.memory_space<smem>>
    %77 = vector.broadcast %76 : f32 to vector<1x8xf32>
    %78 = arith.mulf %77, %24 : vector<1x8xf32>
    %79 = arith.minimumf %75, %78 : vector<1x8xf32>
    %80 = arith.minimumf %72, %79 : vector<1x8xf32>
    %c14 = arith.constant 14 : index
    %81 = memref.load %arg2[%c14] : memref<20xf32, #tpu.memory_space<smem>>
    %82 = vector.broadcast %81 : f32 to vector<1x8xf32>
    %83 = arith.mulf %82, %80 : vector<1x8xf32>
    %84 = math.tanh %83 : vector<1x8xf32>
    %85 = arith.mulf %83, %84 : vector<1x8xf32>
    %c15 = arith.constant 15 : index
    %86 = memref.load %arg2[%c15] : memref<20xf32, #tpu.memory_space<smem>>
    %87 = vector.broadcast %86 : f32 to vector<1x8xf32>
    %88 = arith.mulf %87, %11 : vector<1x8xf32>
    %c16 = arith.constant 16 : index
    %89 = memref.load %arg2[%c16] : memref<20xf32, #tpu.memory_space<smem>>
    %90 = vector.broadcast %89 : f32 to vector<1x8xf32>
    %91 = arith.mulf %90, %16 : vector<1x8xf32>
    %92 = arith.minimumf %88, %91 : vector<1x8xf32>
    %c17 = arith.constant 17 : index
    %93 = memref.load %arg2[%c17] : memref<20xf32, #tpu.memory_space<smem>>
    %94 = vector.broadcast %93 : f32 to vector<1x8xf32>
    %95 = arith.mulf %94, %20 : vector<1x8xf32>
    %c18 = arith.constant 18 : index
    %96 = memref.load %arg2[%c18] : memref<20xf32, #tpu.memory_space<smem>>
    %97 = vector.broadcast %96 : f32 to vector<1x8xf32>
    %98 = arith.mulf %97, %24 : vector<1x8xf32>
    %99 = arith.minimumf %95, %98 : vector<1x8xf32>
    %100 = arith.minimumf %92, %99 : vector<1x8xf32>
    %c19 = arith.constant 19 : index
    %101 = memref.load %arg2[%c19] : memref<20xf32, #tpu.memory_space<smem>>
    %102 = vector.broadcast %101 : f32 to vector<1x8xf32>
    %103 = arith.mulf %102, %100 : vector<1x8xf32>
    %104 = math.tanh %103 : vector<1x8xf32>
    %105 = arith.mulf %103, %104 : vector<1x8xf32>
    %106 = arith.addf %85, %105 : vector<1x8xf32>
    %c0_8 = arith.constant 0 : index
    %c0_9 = arith.constant 0 : index
    %107 = vector.load %arg3[%c0_8, %c0_9] : memref<128x4xbf16, #tpu.memory_space<vmem>>, vector<128x4xbf16>
    %108 = arith.extf %107 : vector<128x4xbf16> to vector<128x4xf32>
    %cst_10 = arith.constant dense<0.000000e+00> : vector<128x8xf32>
    %109 = tpu.matmul %108, %0, %cst_10 {dimension_numbers = #tpu.dot_dimension_numbers<[1], [0], [0], [1], [0, 0, 1, 1], [], []>} : vector<128x4xf32>, vector<4x8xf32>, vector<128x8xf32> -> vector<128x8xf32>
    %c0_11 = arith.constant 0 : index
    %c0_12 = arith.constant 0 : index
    %110 = vector.load %arg4[%c0_11, %c0_12] : memref<128x1xf32, #tpu.memory_space<vmem>>, vector<128x1xf32>
    %111 = vector.broadcast %110 : vector<128x1xf32> to vector<128x8xf32>
    %112 = arith.addf %109, %111 : vector<128x8xf32>
    %cst_13 = arith.constant 0.000000e+00 : f32
    %113 = vector.broadcast %cst_13 : f32 to vector<128x8xf32>
    %114 = arith.cmpf oge, %112, %113 : vector<128x8xf32>
    %cst_14 = arith.constant 0.00999999977 : f32
    %115 = vector.broadcast %cst_14 : f32 to vector<128x8xf32>
    %116 = arith.mulf %115, %112 : vector<128x8xf32>
    %117 = arith.select %114, %112, %116 : vector<128x8xi1>, vector<128x8xf32>
    %c0_15 = arith.constant 0 : index
    %c0_16 = arith.constant 0 : index
    %118 = vector.load %arg5[%c0_15, %c0_16] : memref<128x128xbf16, #tpu.memory_space<vmem>>, vector<128x128xbf16>
    %119 = arith.extf %118 : vector<128x128xbf16> to vector<128x128xf32>
    %cst_17 = arith.constant dense<0.000000e+00> : vector<128x8xf32>
    %120 = tpu.matmul %119, %117, %cst_17 {dimension_numbers = #tpu.dot_dimension_numbers<[1], [0], [0], [1], [0, 0, 1, 1], [], []>} : vector<128x128xf32>, vector<128x8xf32>, vector<128x8xf32> -> vector<128x8xf32>
    %c0_18 = arith.constant 0 : index
    %c0_19 = arith.constant 0 : index
    %121 = vector.load %arg6[%c0_18, %c0_19] : memref<128x1xf32, #tpu.memory_space<vmem>>, vector<128x1xf32>
    %122 = vector.broadcast %121 : vector<128x1xf32> to vector<128x8xf32>
    %123 = arith.addf %120, %122 : vector<128x8xf32>
    %cst_20 = arith.constant 0.000000e+00 : f32
    %124 = vector.broadcast %cst_20 : f32 to vector<128x8xf32>
    %125 = arith.cmpf oge, %123, %124 : vector<128x8xf32>
    %cst_21 = arith.constant 0.00999999977 : f32
    %126 = vector.broadcast %cst_21 : f32 to vector<128x8xf32>
    %127 = arith.mulf %126, %123 : vector<128x8xf32>
    %128 = arith.select %125, %123, %127 : vector<128x8xi1>, vector<128x8xf32>
    %c0_22 = arith.constant 0 : index
    %c0_23 = arith.constant 0 : index
    %129 = vector.load %arg7[%c0_22, %c0_23] : memref<176x128xbf16, #tpu.memory_space<vmem>>, vector<176x128xbf16>
    %130 = arith.extf %129 : vector<176x128xbf16> to vector<176x128xf32>
    %cst_24 = arith.constant dense<0.000000e+00> : vector<176x8xf32>
    %131 = tpu.matmul %130, %128, %cst_24 {dimension_numbers = #tpu.dot_dimension_numbers<[1], [0], [0], [1], [0, 0, 1, 1], [], []>} : vector<176x128xf32>, vector<128x8xf32>, vector<176x8xf32> -> vector<176x8xf32>
    %c0_25 = arith.constant 0 : index
    %c0_26 = arith.constant 0 : index
    %132 = vector.load %arg8[%c0_25, %c0_26] : memref<176x1xf32, #tpu.memory_space<vmem>>, vector<176x1xf32>
    %133 = vector.broadcast %132 : vector<176x1xf32> to vector<176x8xf32>
    %134 = arith.addf %131, %133 : vector<176x8xf32>
    %135 = vector.extract_strided_slice %134 {offsets = [64, 0], sizes = [32, 8], strides = [1, 1]} : vector<176x8xf32> to vector<32x8xf32>
    %136 = vector.extract_strided_slice %134 {offsets = [0, 0], sizes = [32, 8], strides = [1, 1]} : vector<176x8xf32> to vector<32x8xf32>
    %137 = vector.broadcast %65 : vector<1x8xf32> to vector<32x8xf32>
    %138 = arith.mulf %137, %136 : vector<32x8xf32>
    %139 = arith.addf %135, %138 : vector<32x8xf32>
    %140 = vector.extract_strided_slice %134 {offsets = [32, 0], sizes = [32, 8], strides = [1, 1]} : vector<176x8xf32> to vector<32x8xf32>
    %141 = vector.broadcast %106 : vector<1x8xf32> to vector<32x8xf32>
    %142 = arith.mulf %141, %140 : vector<32x8xf32>
    %143 = arith.addf %139, %142 : vector<32x8xf32>
    %cst_27 = arith.constant 0.000000e+00 : f32
    %144 = vector.broadcast %cst_27 : f32 to vector<32x8xf32>
    %145 = arith.cmpf oge, %143, %144 : vector<32x8xf32>
    %cst_28 = arith.constant 0.00999999977 : f32
    %146 = vector.broadcast %cst_28 : f32 to vector<32x8xf32>
    %147 = arith.mulf %146, %143 : vector<32x8xf32>
    %148 = arith.select %145, %143, %147 : vector<32x8xi1>, vector<32x8xf32>
    %149 = vector.extract_strided_slice %134 {offsets = [96, 0], sizes = [32, 8], strides = [1, 1]} : vector<176x8xf32> to vector<32x8xf32>
    %150 = arith.mulf %148, %149 : vector<32x8xf32>
    %cst_29 = arith.constant dense<0.000000e+00> : vector<8xf32>
    %151 = vector.multi_reduction <add>, %150, %cst_29 [0] : vector<32x8xf32> to vector<8xf32>
    %152 = vector.shape_cast %151 : vector<8xf32> to vector<1x8xf32>
    %153 = vector.extract_strided_slice %134 {offsets = [160, 0], sizes = [1, 8], strides = [1, 1]} : vector<176x8xf32> to vector<1x8xf32>
    %154 = arith.addf %152, %153 : vector<1x8xf32>
    %155 = math.tanh %154 : vector<1x8xf32>
    %cst_30 = arith.constant 1.000000e+00 : f32
    %156 = vector.broadcast %cst_30 : f32 to vector<1x8xf32>
    %157 = arith.mulf %156, %155 : vector<1x8xf32>
    %cst_31 = arith.constant 0.899999976 : f32
    %158 = vector.broadcast %cst_31 : f32 to vector<1x8xf32>
    %159 = arith.mulf %65, %158 : vector<1x8xf32>
    %cst_32 = arith.constant 1.000000e-01 : f32
    %160 = vector.broadcast %cst_32 : f32 to vector<1x8xf32>
    %161 = arith.mulf %157, %160 : vector<1x8xf32>
    %162 = arith.addf %159, %161 : vector<1x8xf32>
    %c0_33 = arith.constant 0 : index
    %c0_34 = arith.constant 0 : index
    %163 = vector.load %arg9[%c0_33, %c0_34] : memref<2x8xf32, #tpu.memory_space<vmem>>, vector<1x8xf32>
    tpu.vector_store %arg9[%c0_33, %c0_34], %162 {strides = array<i32>} : memref<2x8xf32, #tpu.memory_space<vmem>>, vector<1x8xf32>,
    %164 = vector.extract_strided_slice %134 {offsets = [128, 0], sizes = [32, 8], strides = [1, 1]} : vector<176x8xf32> to vector<32x8xf32>
    %165 = arith.mulf %148, %164 : vector<32x8xf32>
    %cst_35 = arith.constant dense<0.000000e+00> : vector<8xf32>
    %166 = vector.multi_reduction <add>, %165, %cst_35 [0] : vector<32x8xf32> to vector<8xf32>
    %167 = vector.shape_cast %166 : vector<8xf32> to vector<1x8xf32>
    %168 = vector.extract_strided_slice %134 {offsets = [161, 0], sizes = [1, 8], strides = [1, 1]} : vector<176x8xf32> to vector<1x8xf32>
    %169 = arith.addf %167, %168 : vector<1x8xf32>
    %170 = math.tanh %169 : vector<1x8xf32>
    %cst_36 = arith.constant 1.000000e+00 : f32
    %171 = vector.broadcast %cst_36 : f32 to vector<1x8xf32>
    %172 = arith.mulf %171, %170 : vector<1x8xf32>
    %cst_37 = arith.constant 0.899999976 : f32
    %173 = vector.broadcast %cst_37 : f32 to vector<1x8xf32>
    %174 = arith.mulf %106, %173 : vector<1x8xf32>
    %cst_38 = arith.constant 1.000000e-01 : f32
    %175 = vector.broadcast %cst_38 : f32 to vector<1x8xf32>
    %176 = arith.mulf %172, %175 : vector<1x8xf32>
    %177 = arith.addf %174, %176 : vector<1x8xf32>
    %c1_39 = arith.constant 1 : index
    %c0_40 = arith.constant 0 : index
    %178 = vector.load %arg9[%c1_39, %c0_40] : memref<2x8xf32, #tpu.memory_space<vmem>>, vector<1x8xf32>
    tpu.vector_store %arg9[%c1_39, %c0_40], %177 {strides = array<i32>} : memref<2x8xf32, #tpu.memory_space<vmem>>, vector<1x8xf32>,
    return
  }
  func.func @transform_0(%arg0: i32) -> (i32, i32) {
    %c0_i32 = arith.constant 0 : i32
    %c0_i32_0 = arith.constant 0 : i32
    return %c0_i32, %arg0 : i32, i32
  }
  func.func @transform_1(%arg0: i32) -> i32 {
    %c0_i32 = arith.constant 0 : i32
    %c0_i32_0 = arith.constant 0 : i32
    return %c0_i32 : i32
  }
  func.func @transform_2(%arg0: i32) -> (i32, i32) {
    %c0_i32 = arith.constant 0 : i32
    %c0_i32_0 = arith.constant 0 : i32
    %c0_i32_1 = arith.constant 0 : i32
    return %c0_i32, %c0_i32_0 : i32, i32
  }
  func.func @transform_3(%arg0: i32) -> (i32, i32) {
    %c0_i32 = arith.constant 0 : i32
    %c0_i32_0 = arith.constant 0 : i32
    %c0_i32_1 = arith.constant 0 : i32
    return %c0_i32, %c0_i32_0 : i32, i32
  }
  func.func @transform_4(%arg0: i32) -> (i32, i32) {
    %c0_i32 = arith.constant 0 : i32
    %c0_i32_0 = arith.constant 0 : i32
    %c0_i32_1 = arith.constant 0 : i32
    return %c0_i32, %c0_i32_0 : i32, i32
  }
  func.func @transform_5(%arg0: i32) -> (i32, i32) {
    %c0_i32 = arith.constant 0 : i32
    %c0_i32_0 = arith.constant 0 : i32
    %c0_i32_1 = arith.constant 0 : i32
    return %c0_i32, %c0_i32_0 : i32, i32
  }
  func.func @transform_6(%arg0: i32) -> (i32, i32) {
    %c0_i32 = arith.constant 0 : i32
    %c0_i32_0 = arith.constant 0 : i32
    %c0_i32_1 = arith.constant 0 : i32
    return %c0_i32, %c0_i32_0 : i32, i32
  }
  func.func @transform_7(%arg0: i32) -> (i32, i32) {
    %c0_i32 = arith.constant 0 : i32
    %c0_i32_0 = arith.constant 0 : i32
    %c0_i32_1 = arith.constant 0 : i32
    return %c0_i32, %c0_i32_0 : i32, i32
  }
  func.func @transform_8(%arg0: i32) -> (i32, i32) {
    %c0_i32 = arith.constant 0 : i32
    %c0_i32_0 = arith.constant 0 : i32
    return %c0_i32, %arg0 : i32, i32
  }
}

</mosaic_0001>

<bundles_post_ra>
// kernel: tpu_custom_call.1
= control target key start
LH: loop header
LB: loop body
LE: loop exit
PB: predicated region body
PF: predicated region fallthrough
CT: control target
= control target key end

     0   :  { %13 = vsyncpa [#allocation4], 0  ;;  %s2290_s0 = inlined_call_operand.vmem [shape: f32[4,8], index: 0, kind: input, shape index: {}]   ;;  %s2291_s1 = inlined_call_operand.vmem [shape: f32[20], index: 1, kind: input, shape index: {}]   ;;  %s2292_s2 = inlined_call_operand.vmem [shape: bf16[128,4], index: 2, kind: input, shape index: {}]   ;;  %s2293_s3 = inlined_call_operand.vmem [shape: f32[128,1], index: 3, kind: input, shape index: {}]   ;;  %s2294_s4 = inlined_call_operand.vmem [shape: bf16[128,128], index: 4, kind: input, shape index: {}]   ;;  %s2295_s5 = inlined_call_operand.vmem [shape: f32[128,1], index: 5, kind: input, shape index: {}]   ;;  %s2296_s6 = inlined_call_operand.vmem [shape: bf16[176,128], index: 6, kind: input, shape index: {}]   ;;  %s2297_s7 = inlined_call_operand.vmem [shape: f32[176,1], index: 7, kind: input, shape index: {}]   ;;  %s2298_s8 = inlined_call_operand.hbm [shape: f32[2,8], index: 8, kind: output, shape index: {}]  }
   0x1   :  { %14 = vsyncpa [#allocation3], 0  ;;  %s23_s29 = sshll.u32 %s2291_s1, 4  ;;  %s24_s29 = int_to_ptr.vmem [resolvable:$true] %s23_s29 }
   0x2   :  { %s1829_s30 = scalar_lea.vmem %s24_s29, 16  ;;  %p1834_p1 = scmp.lt.s32.totalorder %s24_s29, %s24_s29 }
   0x3   :  { %p1830_p0 = scmp.ne.s32.totalorder %s24_s29, %s1829_s30  ;;  %p1835_p2 = scmp.lt.s32.totalorder %s1829_s30, %s1829_s30 }
   0x5   :  { %p1836_p3 = por %p1835_p2, %p1834_p1 }
   0x7   :  { %p1837_p4 = pnand %p1836_p3, %p1830_p0 }
   0x9   :  { %1840 = shalt.err (!%p1837_p4)
}
   0xa   :  { %s1867_s9 = smov [#allocation2]  }
   0xb   :  { %26 = dma.vmem_to_smem %s24_s29, 16, %s1867_s9, [#allocation4]  }
   0xc   :  { %1863 = dma.done.wait [#allocation4], 16  }
   0xd   :  { %1864 = vsyncadd [#allocation4], 4294967280 }
   0xe   :  { %42 = sfence }
   0xf   :  { %v210_v0 = vld [vmem:[%s2293_s3 + $0x10] sm:$0xff]  ;;  %v208_v1 = vld [vmem:[%s2293_s3] sm:$0xff]  ;;  %vm353_vm0 = vcmask 1043456   ;;  %v1868_v3 = vmov 0   ;;  %vm304_vm1 = vcmask 31744   ;;  %v1466_v7 = vld [vmem:[%s2292_s2 + $0x8] sm:$0xff]  }
  0x10   :  { %v1927_v2 = vld [vmem:[%s2290_s0] sm:$0xf]  ;;  %1808 = vset.pattern.permute.xlu1 %v1868_v3  ;;  %1807 = vset.pattern.permute.xlu0 %v1868_v3  ;;  %v211_v8 = vld [vmem:[%s2293_s3 + $0x18] sm:$0xff]  ;;  %v209_v9 = vld [vmem:[%s2293_s3 + $0x8] sm:$0xff]  ;;  %v1364_v10 = vunpack.c.l.bf16 %v1466_v7  ;;  %v1365_v12 = vunpack.c.h.bf16 %v1466_v7  ;;  %s2199_s13 = sld [smem:[#allocation2 + $0x8]]  ;;  %s2201_s1 = sld [smem:[#allocation2 + $0xd]] }
  0x11   :  { %v1359_v4 = vld [vmem:[%s2292_s2] sm:$0xff]   ;;  %236 = vperm.xlu1 %1808, %v210_v0   ;;  %226 = vperm.xlu0 %1807, %v208_v1   ;;  %v1467_v11 = vld [vmem:[%s2292_s2 + $0x10] sm:$0xff]   ;;  %v213_v13 = vld [vmem:[%s2293_s3 + $0x28] sm:$0xff]  ;;  %1809 = vtanh.f32 %v1927_v2  ;;  %s2205_s14 = sld [smem:[#allocation2 + $0x12]]  ;;  %s2209_s16 = sld [smem:[#allocation2 + $0x6]] }
  0x12   :  { %v1360_v5 = vunpack.c.l.bf16 %v1359_v4  ;;  %v1361_v6 = vunpack.c.h.bf16 %v1359_v4  ;;  %1577 = vmatprep.subr.msk.mxu1 %vm353_vm0, %v1927_v2  ;;  %v212_v14 = vld [vmem:[%s2293_s3 + $0x20] sm:$0xff]  ;;  %v1368_v15 = vunpack.c.l.bf16 %v1467_v11  ;;  %v1468_v16 = vld [vmem:[%s2292_s2 + $0x18] sm:$0xff]   ;;  %v1369_v17 = vunpack.c.h.bf16 %v1467_v11  ;;  %v214_v19 = vld [vmem:[%s2293_s3 + $0x30] sm:$0xff]  ;;  %s2207_s15 = sld [smem:[#allocation2 + $0x2]]  ;;  %s2211_s17 = sld [smem:[#allocation2 + $0x7]] }
  0x13   :  { %1578 = vmatpush3.msk.msra.mxu1 %vm353_vm0, %v1927_v2  ;;  %v215_v18 = vld [vmem:[%s2293_s3 + $0x38] sm:$0xff]  ;;  %v1372_v20 = vunpack.c.l.bf16 %v1468_v16  ;;  %v1469_v21 = vld [vmem:[%s2292_s2 + $0x20] sm:$0xff]   ;;  %v1373_v22 = vunpack.c.h.bf16 %v1468_v16  ;;  %v217_v23 = vld [vmem:[%s2293_s3 + $0x48] sm:$0xff]  ;;  %s2213_s18 = sld [smem:[#allocation2 + $0xb]]  ;;  %s2215_s0 = sld [smem:[#allocation2 + $0xc]] }
  0x14   :  { %1579 = vmatprep.mubr.msk.f32.mxu1 %vm304_vm1, %v1360_v5  ;;  %v216_v24 = vld [vmem:[%s2293_s3 + $0x40] sm:$0xff]  ;;  %v1376_v25 = vunpack.c.l.bf16 %v1469_v21  ;;  %v1470_v26 = vld [vmem:[%s2292_s2 + $0x28] sm:$0xff]   ;;  %v1377_v27 = vunpack.c.h.bf16 %v1469_v21  ;;  %v219_v28 = vld [vmem:[%s2293_s3 + $0x58] sm:$0xff]  ;;  %s2217_s19 = sld [smem:[#allocation2 + $0x10]]  ;;  %s2219_s20 = sld [smem:[#allocation2 + $0x11]] }
  0x15   :  { %1580 = vmatmul.mubr.msk.f32.vlgmr.msra.gmra.mrb[0].mxu1 %vm304_vm1, %v1361_v6  ;;  %241 = vperm.xlu1 %1808, %v211_v8   ;;  %v218_v29 = vld [vmem:[%s2293_s3 + $0x50] sm:$0xff]  ;;  %v1380_v30 = vunpack.c.l.bf16 %v1470_v26  ;;  %v1381_v32 = vunpack.c.h.bf16 %v1470_v26  ;;  %v221_v33 = vld [vmem:[%s2293_s3 + $0x68] sm:$0xff]  ;;  %v220_v34 = vld [vmem:[%s2293_s3 + $0x60] sm:$0xff]  ;;  %s2223_s21 = sld [smem:[#allocation2 + $0x5]]  ;;  %s2230_s22 = sld [smem:[#allocation2 + $0xf]] }
  0x16   :  { %231 = vperm.xlu0 %1807, %v209_v9   ;;  %1582 = vmatprep.mubr.msk.f32.mxu1 %vm304_vm1, %v1364_v10  ;;  %v1471_v31 = vld [vmem:[%s2292_s2 + $0x30] sm:$0xff]   ;;  %v1472_v36 = vld [vmem:[%s2292_s2 + $0x38] sm:$0xff]   ;;  %v583_v42 = vld [vmem:[%s2295_s5 + $0x8] sm:$0xff]  ;;  %s2246_s23 = sld [smem:[#allocation2 + $0x4]]  ;;  %s2248_s24 = sld [smem:[#allocation2 + $0x9]] }
  0x17   :  { %v1384_v35 = vunpack.c.l.bf16 %v1471_v31  ;;  %v1385_v37 = vunpack.c.h.bf16 %v1471_v31  ;;  %v223_v38 = vld [vmem:[%s2293_s3 + $0x78] sm:$0xff]  ;;  %v222_v39 = vld [vmem:[%s2293_s3 + $0x70] sm:$0xff]  ;;  %v1388_v40 = vunpack.c.l.bf16 %v1472_v36  ;;  %v1389_v41 = vunpack.c.h.bf16 %v1472_v36  ;;  %v582_v43 = vld [vmem:[%s2295_s5] sm:$0xff]  ;;  %s2203_s3 = sld [smem:[#allocation2 + $0x1]]  ;;  %s1335_s25 = sld [smem:[#allocation2 + $0xe]] }
  0x18   :  { %v585_v44 = vld [vmem:[%s2295_s5 + $0x18] sm:$0xff]  ;;  %v584_v45 = vld [vmem:[%s2295_s5 + $0x10] sm:$0xff]  ;;  %v587_v46 = vld [vmem:[%s2295_s5 + $0x28] sm:$0xff]  ;;  %s1340_s26 = sld [smem:[#allocation2 + $0x13]]  ;;  %s1869_s27 = smov [#allocation5]  }
  0x19   :  { %1583 = vmatmul.mubr.msk.f32.gmra.mrb[2].mxu1 %vm304_vm1, %v1365_v12  ;;  %251 = vperm.xlu1 %1808, %v213_v13   ;;  %v586_v47 = vld [vmem:[%s2295_s5 + $0x20] sm:$0xff]  ;;  %v589_v48 = vld [vmem:[%s2295_s5 + $0x38] sm:$0xff]  ;;  %v588_v49 = vld [vmem:[%s2295_s5 + $0x30] sm:$0xff]  ;;  %s1313_s28 = sshll.u32 %s1869_s27, 4  ;;  %s1314_s28 = int_to_ptr.vmem [resolvable:$true] %s1313_s28 }
  0x1a   :  { %246 = vperm.xlu0 %1807, %v212_v14   ;;  %1585 = vmatprep.mubr.msk.f32.mxu1 %vm304_vm1, %v1368_v15  ;;  %v591_v50 = vld [vmem:[%s2295_s5 + $0x48] sm:$0xff]  ;;  %v590_v51 = vld [vmem:[%s2295_s5 + $0x40] sm:$0xff]  ;;  %v593_v52 = vld [vmem:[%s2295_s5 + $0x58] sm:$0xff]  ;;  %s1841_s29 = scalar_lea.vmem %s1314_s28, 32  ;;  %p1846_p6 = scmp.lt.s32.totalorder %s1314_s28, %s1314_s28 }
  0x1b   :  { %v592_v53 = vld [vmem:[%s2295_s5 + $0x50] sm:$0xff]  ;;  %v595_v54 = vld [vmem:[%s2295_s5 + $0x68] sm:$0xff]  ;;  %v594_v55 = vld [vmem:[%s2295_s5 + $0x60] sm:$0xff]  ;;  %p1842_p5 = scmp.ne.s32.totalorder %s1314_s28, %s1841_s29  ;;  %p1847_p7 = scmp.lt.s32.totalorder %s1841_s29, %s1841_s29 }
  0x1c   :  { %v597_v56 = vld [vmem:[%s2295_s5 + $0x78] sm:$0xff]  ;;  %v596_v57 = vld [vmem:[%s2295_s5 + $0x70] sm:$0xff]  ;;  %v916_v58 = vld [vmem:[%s2297_s7 + $0x8] sm:$0xff]  ;;  %s2226_s5 = sld [smem:[#allocation2 + $0xa]] }
  0x1d   :  { %1586 = vmatmul.mubr.msk.f32.gmra.mrb[4].mxu1 %vm304_vm1, %v1369_v17  ;;  %261 = vperm.xlu1 %1808, %v215_v18   ;;  %v915_v59 = vld [vmem:[%s2297_s7] sm:$0xff]  ;;  %v917_v61 = vld [vmem:[%s2297_s7 + $0x10] sm:$0xff]  ;;  %v920_v63 = vld [vmem:[%s2297_s7 + $0x28] sm:$0xff]  ;;  %p1848_p8 = por %p1847_p7, %p1846_p6 }
  0x1e   :  { %256 = vperm.xlu0 %1807, %v214_v19   ;;  %1588 = vmatprep.mubr.msk.f32.mxu1 %vm304_vm1, %v1372_v20  ;;  %v919_v60 = vld [vmem:[%s2297_s7 + $0x20] sm:$0xff]  ;;  %v918_v0 = vld [vmem:[%s2297_s7 + $0x18] sm:$0xff]  ;;  %v924_v1 = vld [vmem:[%s2297_s7 + $0x48] sm:$0xff] }
  0x1f   :  { %v923_v62 = vld [vmem:[%s2297_s7 + $0x40] sm:$0xff]  ;;  %v925_v3 = vld [vmem:[%s2297_s7 + $0x50] sm:$0xff]  ;;  %v926_v5 = vld [vmem:[%s2297_s7 + $0x58] sm:$0xff]  ;;  %p1849_p9 = pnand %p1848_p8, %p1842_p5 }
  0x20   :  { %v921_v4 = vld [vmem:[%s2297_s7 + $0x30] sm:$0xff]  ;;  %v922_v6 = vld [vmem:[%s2297_s7 + $0x38] sm:$0xff]  ;;  %v932_v7 = vld [vmem:[%s2297_s7 + $0x88] sm:$0xff] }
  0x21   :  { %1589 = vmatmul.mubr.msk.f32.gmra.mrb[6].mxu1 %vm304_vm1, %v1373_v22  ;;  %271 = vperm.xlu1 %1808, %v217_v23   ;;  %v931_v8 = vld [vmem:[%s2297_s7 + $0x80] sm:$0xff]  ;;  %v928_v9 = vld [vmem:[%s2297_s7 + $0x68] sm:$0xff]  ;;  %v929_v11 = vld [vmem:[%s2297_s7 + $0x70] sm:$0xff] }
  0x22   :  { %266 = vperm.xlu0 %1807, %v216_v24   ;;  %1591 = vmatprep.mubr.msk.f32.mxu1 %vm304_vm1, %v1376_v25  ;;  %v927_v10 = vld [vmem:[%s2297_s7 + $0x60] sm:$0xff]  ;;  %v933_v12 = vld [vmem:[%s2297_s7 + $0x90] sm:$0xff]  ;;  %v930_v13 = vld [vmem:[%s2297_s7 + $0x78] sm:$0xff] }
  0x23   :  { %v934_v14 = vld [vmem:[%s2297_s7 + $0x98] sm:$0xff]  ;;  %v935_v15 = vld [vmem:[%s2297_s7 + $0xa0] sm:$0xff] }
  0x24   :  { %v2127_v16 = vld [vmem:[%s2294_s4] sm:$0xff]  }
  0x25   :  { %1592 = vmatmul.mubr.msk.f32.gmra.mrb[8].mxu1 %vm304_vm1, %v1377_v27  ;;  %281 = vperm.xlu1 %1808, %v219_v28   ;;  %v1392_v17 = vunpack.c.l.bf16 %v2127_v16 }
  0x26   :  { %276 = vperm.xlu0 %1807, %v218_v29   ;;  %1594 = vmatprep.mubr.msk.f32.mxu1 %vm304_vm1, %v1380_v30 }
  0x29   :  { %1595 = vmatmul.mubr.msk.f32.gmra.mrb[10].mxu1 %vm304_vm1, %v1381_v32  ;;  %291 = vperm.xlu1 %1808, %v221_v33  }
  0x2a   :  { %286 = vperm.xlu0 %1807, %v220_v34   ;;  %1597 = vmatprep.mubr.msk.f32.mxu1 %vm304_vm1, %v1384_v35 }
  0x2d   :  { %1598 = vmatmul.mubr.msk.f32.gmra.mrb[12].mxu1 %vm304_vm1, %v1385_v37  ;;  %301 = vperm.xlu1 %1808, %v223_v38  }
  0x2e   :  { %296 = vperm.xlu0 %1807, %v222_v39   ;;  %1600 = vmatprep.mubr.msk.f32.mxu1 %vm304_vm1, %v1388_v40 }
  0x31   :  { %1601 = vmatmul.mubr.msk.f32.gmra.mrb[14].mxu1 %vm304_vm1, %v1389_v41  ;;  %605 = vperm.xlu1 %1808, %v583_v42  }
  0x32   :  { %600 = vperm.xlu0 %1807, %v582_v43   ;;  %1635 = vmatprep.mubr.f32.mxu1 %v1392_v17 }
  0x35   :  { %615 = vperm.xlu1 %1808, %v585_v44  }
  0x36   :  { %610 = vperm.xlu0 %1807, %v584_v45  }
  0x39   :  { %625 = vperm.xlu1 %1808, %v587_v46  }
  0x3a   :  { %620 = vperm.xlu0 %1807, %v586_v47  }
  0x3d   :  { %635 = vperm.xlu1 %1808, %v589_v48  }
  0x3e   :  { %630 = vperm.xlu0 %1807, %v588_v49  }
  0x41   :  { %645 = vperm.xlu1 %1808, %v591_v50  }
  0x42   :  { %640 = vperm.xlu0 %1807, %v590_v51  }
  0x45   :  { %655 = vperm.xlu1 %1808, %v593_v52  }
  0x46   :  { %650 = vperm.xlu0 %1807, %v592_v53  }
  0x49   :  { %665 = vperm.xlu1 %1808, %v595_v54  }
  0x4a   :  { %660 = vperm.xlu0 %1807, %v594_v55  }
  0x4d   :  { %675 = vperm.xlu1 %1808, %v597_v56  }
  0x4e   :  { %670 = vperm.xlu0 %1807, %v596_v57  }
  0x51   :  { %944 = vperm.xlu1 %1808, %v916_v58  }
  0x52   :  { %939 = vperm.xlu0 %1807, %v915_v59  }
  0x55   :  { %959 = vperm.xlu1 %1808, %v919_v60  }
  0x56   :  { %949 = vperm.xlu0 %1807, %v917_v61  }
  0x59   :  { %979 = vperm.xlu1 %1808, %v923_v62  }
  0x5a   :  { %964 = vperm.xlu0 %1807, %v920_v63  }
  0x5d   :  { %954 = vperm.xlu1 %1808, %v918_v0  }
  0x5e   :  { %984 = vperm.xlu0 %1807, %v924_v1  }
  0x61   :  { %989 = vperm.xlu1 %1808, %v925_v3  }
  0x62   :  { %969 = vperm.xlu0 %1807, %v921_v4  }
  0x65   :  { %994 = vperm.xlu1 %1808, %v926_v5  }
  0x66   :  { %974 = vperm.xlu0 %1807, %v922_v6  }
  0x69   :  { %1024 = vperm.xlu1 %1808, %v932_v7  }
  0x6a   :  { %1019 = vperm.xlu0 %1807, %v931_v8  }
  0x6d   :  { %1004 = vperm.xlu1 %1808, %v928_v9  }
  0x6e   :  { %999 = vperm.xlu0 %1807, %v927_v10  }
  0x71   :  { %1009 = vperm.xlu1 %1808, %v929_v11  }
  0x72   :  { %1029 = vperm.xlu0 %1807, %v933_v12  }
  0x75   :  { %1014 = vperm.xlu1 %1808, %v930_v13  }
  0x76   :  { %1034 = vperm.xlu0 %1807, %v934_v14  }
  0x7a   :  { %1039 = vperm.xlu0 %1807, %v935_v15  }
  0x90   :  { %v237_v18 = vpop.permute.xlu1 %236  ;;  %v227_v19 = vpop.permute.xlu0 %226 }
  0x94   :  { %v242_v20 = vpop.permute.xlu1 %241 }
  0x95   :  { %v232_v21 = vpop.permute.xlu0 %231 }
  0x98   :  { %v252_v22 = vpop.permute.xlu1 %251 }
  0x99   :  { %v247_v23 = vpop.permute.xlu0 %246 }
  0x9c   :  { %v262_v29 = vpop.permute.xlu1 %261 }
  0x9d   :  { %v257_v32 = vpop.permute.xlu0 %256 }
  0xa0   :  { %v272_v45 = vpop.permute.xlu1 %271 }
  0xa1   :  { %v267_v48 = vpop.permute.xlu0 %266 }
  0xa4   :  { %v282_v60 = vpop.permute.xlu1 %281 }
  0xa5   :  { %v277_v63 = vpop.permute.xlu0 %276 }
  0xa8   :  { %v292_v13 = vpop.permute.xlu1 %291 }
  0xa9   :  { %v287_v17 = vpop.permute.xlu0 %286 }
  0xe8   :  { %v1581_v24 = vpop.f32.mrb[0].mxu1 }
  0xe9   :  { %v429_v25 = vadd.f32 %v1581_v24, %v232_v21  ;;  %v423_v26 = vpop.f32.mrb[1].mxu1 }
  0xea   :  { %v424_v27 = vadd.f32 %v423_v26, %v227_v19 }
  0xeb   :  { %vm503_vm2 = vcmp.ge.f32.partialorder %v429_v25, 0.0  ;;  %v519_v28 = vmul.f32 0.01, %v429_v25 }
  0xec   :  { %vm502_vm3 = vcmp.ge.f32.partialorder %v424_v27, 0.0  ;;  %v518_v30 = vmul.f32 0.01, %v424_v27  ;;  %v1584_v31 = vpop.f32.mrb[2].mxu1 }
  0xed   :  { %v439_v33 = vadd.f32 %v1584_v31, %v242_v20  ;;  %v433_v34 = vpop.f32.mrb[3].mxu1  ;;  %v535_v35 = vsel %vm503_vm2, %v429_v25, %v519_v28 }
  0xee   :  { %v434_v36 = vadd.f32 %v433_v34, %v237_v18  ;;  %v534_v37 = vsel %vm502_vm3, %v424_v27, %v518_v30 }
  0xef   :  { %vm505_vm4 = vcmp.ge.f32.partialorder %v439_v33, 0.0  ;;  %v521_v38 = vmul.f32 0.01, %v439_v33  ;;  %v1724_v39 = vpack.c.bf16 %v535_v35, %v534_v37 }
  0xf0   :  { %vm504_vm5 = vcmp.ge.f32.partialorder %v434_v36, 0.0  ;;  %v520_v40 = vmul.f32 0.01, %v434_v36  ;;  %v1587_v41 = vpop.f32.mrb[4].mxu1 }
  0xf1   :  { %v449_v42 = vadd.f32 %v1587_v41, %v252_v22  ;;  %v443_v43 = vpop.f32.mrb[5].mxu1  ;;  %1725 = vmatprep.subr.bf16.mxu1 %v1724_v39  ;;  %v537_v44 = vsel %vm505_vm4, %v439_v33, %v521_v38 }
  0xf2   :  { %v444_v46 = vadd.f32 %v443_v43, %v247_v23  ;;  %1727 = vmatpush3.bf16.msra.mxu1 %v1724_v39  ;;  %v536_v47 = vsel %vm504_vm5, %v434_v36, %v520_v40 }
  0xf3   :  { %vm507_vm6 = vcmp.ge.f32.partialorder %v449_v42, 0.0  ;;  %v523_v49 = vmul.f32 0.01, %v449_v42  ;;  %v1728_v50 = vpack.c.bf16 %v537_v44, %v536_v47  ;;  %v1473_v44 = vld [vmem:[%s2294_s4 + $0x8] sm:$0xff]   ;;  %v1474_v47 = vld [vmem:[%s2294_s4 + $0x10] sm:$0xff]  }
  0xf4   :  { %vm506_vm7 = vcmp.ge.f32.partialorder %v444_v46, 0.0  ;;  %v522_v51 = vmul.f32 0.01, %v444_v46  ;;  %v1590_v52 = vpop.f32.mrb[6].mxu1 }
  0xf5   :  { %v459_v53 = vadd.f32 %v1590_v52, %v262_v29  ;;  %v453_v54 = vpop.f32.mrb[7].mxu1  ;;  %1729 = vmatprep.subr.bf16.mxu1 %v1728_v50  ;;  %v539_v55 = vsel %vm507_vm6, %v449_v42, %v523_v49  ;;  %v302_v29 = vpop.permute.xlu1 %301  ;;  %v1400_v49 = vunpack.c.l.bf16 %v1474_v47 }
  0xf6   :  { %v454_v56 = vadd.f32 %v453_v54, %v257_v32  ;;  %1731 = vmatpush3.bf16.msra.mxu1 %v1728_v50  ;;  %v538_v57 = vsel %vm506_vm7, %v444_v46, %v522_v51  ;;  %v297_v32 = vpop.permute.xlu0 %296  ;;  %v1396_v46 = vunpack.c.l.bf16 %v1473_v44  ;;  %v1475_v50 = vld [vmem:[%s2294_s4 + $0x18] sm:$0xff]   ;;  %v1401_v51 = vunpack.c.h.bf16 %v1474_v47 }
  0xf7   :  { %vm509_vm8 = vcmp.ge.f32.partialorder %v459_v53, 0.0  ;;  %v525_v58 = vmul.f32 0.01, %v459_v53  ;;  %v1732_v59 = vpack.c.bf16 %v539_v55, %v538_v57  ;;  %v1404_v52 = vunpack.c.l.bf16 %v1475_v50  ;;  %v1477_v55 = vld [vmem:[%s2294_s4 + $0x28] sm:$0xff]  }
  0xf8   :  { %vm508_vm9 = vcmp.ge.f32.partialorder %v454_v56, 0.0  ;;  %v524_v61 = vmul.f32 0.01, %v454_v56  ;;  %v1593_v62 = vpop.f32.mrb[8].mxu1  ;;  %v1412_v57 = vunpack.c.l.bf16 %v1477_v55 }
  0xf9   :  { %v469_v0 = vadd.f32 %v1593_v62, %v272_v45  ;;  %v463_v1 = vpop.f32.mrb[9].mxu1  ;;  %1733 = vmatprep.subr.bf16.mxu1 %v1732_v59  ;;  %v541_v3 = vsel %vm509_vm8, %v459_v53, %v525_v58  ;;  %v1393_v45 = vunpack.c.h.bf16 %v2127_v16  ;;  %v1476_v16 = vld [vmem:[%s2294_s4 + $0x20] sm:$0xff]   ;;  %v1405_v53 = vunpack.c.h.bf16 %v1475_v50  ;;  %v1478_v58 = vld [vmem:[%s2294_s4 + $0x30] sm:$0xff]  }
  0xfa   :  { %v464_v4 = vadd.f32 %v463_v1, %v267_v48  ;;  %1735 = vmatpush3.bf16.msra.mxu1 %v1732_v59  ;;  %v540_v5 = vsel %vm508_vm9, %v454_v56, %v524_v61  ;;  %v1397_v48 = vunpack.c.h.bf16 %v1473_v44  ;;  %v1408_v54 = vunpack.c.l.bf16 %v1476_v16  ;;  %v1479_v61 = vld [vmem:[%s2294_s4 + $0x38] sm:$0xff]   ;;  %v2155_v1 = vld [vmem:[%s2296_s6] sm:$0xff]   ;;  %s2221_s4 = sld [smem:[#allocation2]] }
  0xfb   :  { %vm511_vm10 = vcmp.ge.f32.partialorder %v469_v0, 0.0  ;;  %v527_v6 = vmul.f32 0.01, %v469_v0  ;;  %v1736_v7 = vpack.c.bf16 %v541_v3, %v540_v5  ;;  %v1409_v56 = vunpack.c.h.bf16 %v1476_v16  ;;  %v2160_v3 = vld [vmem:[%s2296_s6 + $0x50] sm:$0xff]  }
  0xfc   :  { %vm510_vm11 = vcmp.ge.f32.partialorder %v464_v4, 0.0  ;;  %v526_v8 = vmul.f32 0.01, %v464_v4  ;;  %v1596_v9 = vpop.f32.mrb[10].mxu1  ;;  %v1413_v59 = vunpack.c.h.bf16 %v1477_v55  ;;  %v1417_v62 = vunpack.c.h.bf16 %v1478_v58 }
  0xfd   :  { %v479_v10 = vadd.f32 %v1596_v9, %v282_v60  ;;  %v473_v11 = vpop.f32.mrb[11].mxu1  ;;  %1737 = vmatprep.subr.bf16.mxu1 %v1736_v7  ;;  %v543_v12 = vsel %vm511_vm10, %v469_v0, %v527_v6  ;;  %v1416_v60 = vunpack.c.l.bf16 %v1478_v58  ;;  %v1421_v0 = vunpack.c.h.bf16 %v1479_v61  ;;  %v606_v6 = vpop.permute.xlu1 %605 }
  0xfe   :  { %v474_v14 = vadd.f32 %v473_v11, %v277_v63  ;;  %1739 = vmatpush3.bf16.msra.mxu1 %v1736_v7  ;;  %v542_v15 = vsel %vm510_vm11, %v464_v4, %v526_v8  ;;  %v1420_v63 = vunpack.c.l.bf16 %v1479_v61  ;;  %v1424_v4 = vunpack.c.l.bf16 %v2155_v1  ;;  %v601_v7 = vpop.permute.xlu0 %600 }
  0xff   :  { %vm513_vm12 = vcmp.ge.f32.partialorder %v479_v10, 0.0  ;;  %v529_v18 = vmul.f32 0.01, %v479_v10  ;;  %v1740_v19 = vpack.c.bf16 %v543_v12, %v542_v15  ;;  %v1464_v5 = vunpack.c.l.bf16 %v2160_v3 }
 0x100   :  { %vm512_vm13 = vcmp.ge.f32.partialorder %v474_v14, 0.0  ;;  %v528_v20 = vmul.f32 0.01, %v474_v14  ;;  %v1599_v21 = vpop.f32.mrb[12].mxu1  ;;  %1691 = vmatprep.mubr.f32.mxu0 %v1424_v4 }
 0x101   :  { %v489_v22 = vadd.f32 %v1599_v21, %v292_v13  ;;  %v483_v23 = vpop.f32.mrb[13].mxu1  ;;  %1741 = vmatprep.subr.bf16.mxu1 %v1740_v19  ;;  %v545_v24 = vsel %vm513_vm12, %v479_v10, %v529_v18  ;;  %v616_v8 = vpop.permute.xlu1 %615 }
 0x102   :  { %v484_v25 = vadd.f32 %v483_v23, %v287_v17  ;;  %1743 = vmatpush3.bf16.msra.mxu1 %v1740_v19  ;;  %v544_v26 = vsel %vm512_vm13, %v474_v14, %v528_v20  ;;  %v611_v9 = vpop.permute.xlu0 %610 }
 0x103   :  { %vm515_vm14 = vcmp.ge.f32.partialorder %v489_v22, 0.0  ;;  %v531_v27 = vmul.f32 0.01, %v489_v22  ;;  %v1744_v28 = vpack.c.bf16 %v545_v24, %v544_v26 }
 0x104   :  { %vm514_vm15 = vcmp.ge.f32.partialorder %v484_v25, 0.0  ;;  %v530_v30 = vmul.f32 0.01, %v484_v25  ;;  %v1602_v31 = vpop.f32.mrb[14].mxu1 }
 0x105   :  { %v499_v33 = vadd.f32 %v1602_v31, %v302_v29  ;;  %v493_v34 = vpop.f32.mrb[15].mxu1  ;;  %1745 = vmatprep.subr.bf16.mxu1 %v1744_v28  ;;  %v547_v35 = vsel %vm515_vm14, %v489_v22, %v531_v27  ;;  %v626_v10 = vpop.permute.xlu1 %625 }
 0x106   :  { %v494_v36 = vadd.f32 %v493_v34, %v297_v32  ;;  %1747 = vmatpush3.bf16.msra.mxu1 %v1744_v28  ;;  %v546_v37 = vsel %vm514_vm15, %v484_v25, %v530_v30  ;;  %v621_v11 = vpop.permute.xlu0 %620 }
 0x107   :  { %vm517_vm0 = vcmp.ge.f32.partialorder %v499_v33, 0.0  ;;  %v533_v38 = vmul.f32 0.01, %v499_v33  ;;  %v1748_v39 = vpack.c.bf16 %v547_v35, %v546_v37 }
 0x108   :  { %vm516_vm1 = vcmp.ge.f32.partialorder %v494_v36, 0.0  ;;  %v532_v40 = vmul.f32 0.01, %v494_v36 }
 0x109   :  { %1749 = vmatprep.subr.bf16.mxu1 %v1748_v39  ;;  %v549_v41 = vsel %vm517_vm0, %v499_v33, %v533_v38  ;;  %v636_v18 = vpop.permute.xlu1 %635 }
 0x10a   :  { %1751 = vmatpush3.bf16.msra.mxu1 %v1748_v39  ;;  %v548_v42 = vsel %vm516_vm1, %v494_v36, %v532_v40  ;;  %v631_v21 = vpop.permute.xlu0 %630 }
 0x10b   :  { %v1752_v43 = vpack.c.bf16 %v549_v41, %v548_v42 }
 0x10d   :  { %1753 = vmatprep.subr.bf16.mxu1 %v1752_v43  ;;  %v646_v34 = vpop.permute.xlu1 %645 }
 0x10e   :  { %1755 = vmatpush3.bf16.msra.mxu1 %v1752_v43  ;;  %v641_v37 = vpop.permute.xlu0 %640 }
 0x111   :  { %1636 = vmatmul.mubr.f32.vlgmr.msra.gmra.mrb[16].mxu1 %v1393_v45 }
 0x112   :  { %1638 = vmatprep.mubr.f32.mxu1 %v1396_v46 }
 0x115   :  { %1639 = vmatmul.mubr.f32.gmra.mrb[18].mxu1 %v1397_v48 }
 0x116   :  { %1641 = vmatprep.mubr.f32.mxu1 %v1400_v49  ;;  %v656_v49 = vpop.permute.xlu1 %655 }
 0x119   :  { %1642 = vmatmul.mubr.f32.gmra.mrb[20].mxu1 %v1401_v51 }
 0x11a   :  { %1644 = vmatprep.mubr.f32.mxu1 %v1404_v52  ;;  %v651_v52 = vpop.permute.xlu0 %650 }
 0x11d   :  { %1645 = vmatmul.mubr.f32.gmra.mrb[22].mxu1 %v1405_v53 }
 0x11e   :  { %1647 = vmatprep.mubr.f32.mxu1 %v1408_v54 }
 0x121   :  { %1648 = vmatmul.mubr.f32.gmra.mrb[24].mxu1 %v1409_v56 }
 0x122   :  { %1650 = vmatprep.mubr.f32.mxu1 %v1412_v57 }
 0x125   :  { %1651 = vmatmul.mubr.f32.gmra.mrb[26].mxu1 %v1413_v59 }
 0x126   :  { %1653 = vmatprep.mubr.f32.mxu1 %v1416_v60 }
 0x129   :  { %1654 = vmatmul.mubr.f32.gmra.mrb[28].mxu1 %v1417_v62 }
 0x12a   :  { %1656 = vmatprep.mubr.f32.mxu1 %v1420_v63 }
 0x12d   :  { %1657 = vmatmul.mubr.f32.gmra.mrb[30].mxu1 %v1421_v0  ;;  %v666_v0 = vpop.permute.xlu1 %665 }
 0x12e   :  { %1721 = vmatprep.mubr.f32.mxu1 %v1464_v5 }
 0x1e4   :  { %v1637_v12 = vpop.f32.mrb[16].mxu1 }
 0x1e5   :  { %v750_v13 = vadd.f32 %v1637_v12, %v606_v6  ;;  %v744_v14 = vpop.f32.mrb[17].mxu1  ;;  %v661_v6 = vpop.permute.xlu0 %660 }
 0x1e6   :  { %v745_v15 = vadd.f32 %v744_v14, %v601_v7 }
 0x1e7   :  { %vm824_vm2 = vcmp.ge.f32.partialorder %v750_v13, 0.0  ;;  %v840_v17 = vmul.f32 0.01, %v750_v13 }
 0x1e8   :  { %vm823_vm3 = vcmp.ge.f32.partialorder %v745_v15, 0.0  ;;  %v839_v19 = vmul.f32 0.01, %v745_v15  ;;  %v1640_v20 = vpop.f32.mrb[18].mxu1 }
 0x1e9   :  { %v856_v22 = vsel %vm824_vm2, %v750_v13, %v840_v17  ;;  %v760_v23 = vadd.f32 %v1640_v20, %v616_v8  ;;  %v754_v24 = vpop.f32.mrb[19].mxu1 }
 0x1ea   :  { %v855_v25 = vsel %vm823_vm3, %v745_v15, %v839_v19  ;;  %v755_v26 = vadd.f32 %v754_v24, %v611_v9  ;;  %v676_v19 = vpop.permute.xlu1 %675 }
 0x1eb   :  { %v1756_v27 = vpack.c.bf16 %v856_v22, %v855_v25  ;;  %vm826_vm4 = vcmp.ge.f32.partialorder %v760_v23, 0.0  ;;  %v842_v28 = vmul.f32 0.01, %v760_v23  ;;  %v671_v22 = vpop.permute.xlu0 %670 }
 0x1ec   :  { %vm825_vm5 = vcmp.ge.f32.partialorder %v755_v26, 0.0  ;;  %v841_v29 = vmul.f32 0.01, %v755_v26  ;;  %v1643_v30 = vpop.f32.mrb[20].mxu1 }
 0x1ed   :  { %v858_v31 = vsel %vm826_vm4, %v760_v23, %v842_v28  ;;  %v770_v32 = vadd.f32 %v1643_v30, %v626_v10  ;;  %v764_v33 = vpop.f32.mrb[21].mxu1  ;;  %1757 = vmatprep.subr.bf16.mxu0 %v1756_v27  ;;  %1788 = vmatprep.subr.bf16.mxu1 %v1756_v27  ;;  %vm1260_vm4 = vcmask 64512  }
 0x1ee   :  { %v857_v35 = vsel %vm825_vm5, %v755_v26, %v841_v29  ;;  %v765_v36 = vadd.f32 %v764_v33, %v621_v11  ;;  %1759 = vmatpush3.bf16.msra.mxu0 %v1756_v27  ;;  %1796 = vmatpush3.bf16.msra.mxu1 %v1756_v27 }
 0x1ef   :  { %v1760_v38 = vpack.c.bf16 %v858_v31, %v857_v35  ;;  %vm828_vm6 = vcmp.ge.f32.partialorder %v770_v32, 0.0  ;;  %v844_v39 = vmul.f32 0.01, %v770_v32  ;;  %v1425_v35 = vunpack.c.h.bf16 %v2155_v1 }
 0x1f0   :  { %vm827_vm7 = vcmp.ge.f32.partialorder %v765_v36, 0.0  ;;  %v843_v40 = vmul.f32 0.01, %v765_v36  ;;  %v1646_v41 = vpop.f32.mrb[22].mxu1 }
 0x1f1   :  { %v860_v42 = vsel %vm828_vm6, %v770_v32, %v844_v39  ;;  %v780_v43 = vadd.f32 %v1646_v41, %v636_v18  ;;  %v774_v44 = vpop.f32.mrb[23].mxu1  ;;  %1761 = vmatprep.subr.bf16.mxu0 %v1760_v38  ;;  %1789 = vmatprep.subr.bf16.mxu1 %v1760_v38  ;;  %v1482_v41 = vld [vmem:[%s2296_s6 + $0x18] sm:$0xff]  }
 0x1f2   :  { %v859_v45 = vsel %vm827_vm7, %v765_v36, %v843_v40  ;;  %v775_v46 = vadd.f32 %v774_v44, %v631_v21  ;;  %1763 = vmatpush3.bf16.msra.mxu0 %v1760_v38  ;;  %1797 = vmatpush3.bf16.msra.mxu1 %v1760_v38  ;;  %v1465_v36 = vunpack.c.h.bf16 %v2160_v3  ;;  %v1481_v38 = vld [vmem:[%s2296_s6 + $0x10] sm:$0xff]   ;;  %v1436_v3 = vunpack.c.l.bf16 %v1482_v41 }
 0x1f3   :  { %v1764_v47 = vpack.c.bf16 %v860_v42, %v859_v45  ;;  %vm830_vm8 = vcmp.ge.f32.partialorder %v780_v43, 0.0  ;;  %v846_v48 = vmul.f32 0.01, %v780_v43  ;;  %v1432_v40 = vunpack.c.l.bf16 %v1481_v38  ;;  %v1483_v42 = vld [vmem:[%s2296_s6 + $0x20] sm:$0xff]   ;;  %v1484_v45 = vld [vmem:[%s2296_s6 + $0x28] sm:$0xff]  }
 0x1f4   :  { %vm829_vm9 = vcmp.ge.f32.partialorder %v775_v46, 0.0  ;;  %v845_v50 = vmul.f32 0.01, %v775_v46  ;;  %v1649_v51 = vpop.f32.mrb[24].mxu1  ;;  %v1433_v1 = vunpack.c.h.bf16 %v1481_v38  ;;  %v1440_v44 = vunpack.c.l.bf16 %v1483_v42 }
 0x1f5   :  { %v862_v16 = vsel %vm830_vm8, %v780_v43, %v846_v48  ;;  %v790_v53 = vadd.f32 %v1649_v51, %v646_v34  ;;  %v784_v54 = vpop.f32.mrb[25].mxu1  ;;  %1765 = vmatprep.subr.bf16.mxu0 %v1764_v47  ;;  %1790 = vmatprep.subr.bf16.mxu1 %v1764_v47  ;;  %v1480_v34 = vld [vmem:[%s2296_s6 + $0x8] sm:$0xff]   ;;  %v1437_v43 = vunpack.c.h.bf16 %v1482_v41  ;;  %v1485_v48 = vld [vmem:[%s2296_s6 + $0x30] sm:$0xff]   ;;  %v1486_v51 = vld [vmem:[%s2296_s6 + $0x38] sm:$0xff]   ;;  %v118_v41 = vstv %s2226_s5 }
 0x1f6   :  { %v861_v55 = vsel %vm829_vm9, %v775_v46, %v845_v50  ;;  %v785_v56 = vadd.f32 %v784_v54, %v641_v37  ;;  %1767 = vmatpush3.bf16.msra.mxu0 %v1764_v47  ;;  %1798 = vmatpush3.bf16.msra.mxu1 %v1764_v47  ;;  %v1428_v37 = vunpack.c.l.bf16 %v1480_v34  ;;  %v1429_v39 = vunpack.c.h.bf16 %v1480_v34 }
 0x1f7   :  { %v1768_v57 = vpack.c.bf16 %v862_v16, %v861_v55  ;;  %vm832_vm10 = vcmp.ge.f32.partialorder %v790_v53, 0.0  ;;  %v848_v58 = vmul.f32 0.01, %v790_v53  ;;  %v1441_v46 = vunpack.c.h.bf16 %v1483_v42 }
 0x1f8   :  { %vm831_vm11 = vcmp.ge.f32.partialorder %v785_v56, 0.0  ;;  %v847_v59 = vmul.f32 0.01, %v785_v56  ;;  %v1652_v60 = vpop.f32.mrb[26].mxu1  ;;  %v1444_v47 = vunpack.c.l.bf16 %v1484_v45  ;;  %v1448_v50 = vunpack.c.l.bf16 %v1485_v48 }
 0x1f9   :  { %v864_v61 = vsel %vm832_vm10, %v790_v53, %v848_v58  ;;  %v800_v62 = vadd.f32 %v1652_v60, %v656_v49  ;;  %v794_v63 = vpop.f32.mrb[27].mxu1  ;;  %1769 = vmatprep.subr.bf16.mxu0 %v1768_v57  ;;  %1791 = vmatprep.subr.bf16.mxu1 %v1768_v57  ;;  %v1445_v49 = vunpack.c.h.bf16 %v1484_v45  ;;  %v1452_v16 = vunpack.c.l.bf16 %v1486_v51  ;;  %v1487_v53 = vld [vmem:[%s2296_s6 + $0x40] sm:$0xff]  }
 0x1fa   :  { %v863_v4 = vsel %vm831_vm11, %v785_v56, %v847_v59  ;;  %v795_v5 = vadd.f32 %v794_v63, %v651_v52  ;;  %1771 = vmatpush3.bf16.msra.mxu0 %v1768_v57  ;;  %1799 = vmatpush3.bf16.msra.mxu1 %v1768_v57  ;;  %v1449_v52 = vunpack.c.h.bf16 %v1485_v48  ;;  %v1453_v54 = vunpack.c.h.bf16 %v1486_v51  ;;  %v1488_v56 = vld [vmem:[%s2296_s6 + $0x48] sm:$0xff]   ;;  %s1324_s6 = sld [smem:[#allocation2 + $0x3]] }
 0x1fb   :  { %v1772_v7 = vpack.c.bf16 %v864_v61, %v863_v4  ;;  %vm834_vm12 = vcmp.ge.f32.partialorder %v800_v62, 0.0  ;;  %v850_v8 = vmul.f32 0.01, %v800_v62  ;;  %v1456_v55 = vunpack.c.l.bf16 %v1487_v53 }
 0x1fc   :  { %vm833_vm13 = vcmp.ge.f32.partialorder %v795_v5, 0.0  ;;  %v849_v9 = vmul.f32 0.01, %v795_v5  ;;  %v1655_v10 = vpop.f32.mrb[28].mxu1  ;;  %v1457_v57 = vunpack.c.h.bf16 %v1487_v53  ;;  %v1460_v58 = vunpack.c.l.bf16 %v1488_v56 }
 0x1fd   :  { %v866_v11 = vsel %vm834_vm12, %v800_v62, %v850_v8  ;;  %v810_v12 = vadd.f32 %v1655_v10, %v666_v0  ;;  %v804_v13 = vpop.f32.mrb[29].mxu1  ;;  %1773 = vmatprep.subr.bf16.mxu0 %v1772_v7  ;;  %1792 = vmatprep.subr.bf16.mxu1 %v1772_v7  ;;  %v1461_v59 = vunpack.c.h.bf16 %v1488_v56  ;;  %v51_v60 = vsub.f32 0.0, %v1927_v2 }
 0x1fe   :  { %v865_v14 = vsel %vm833_vm13, %v795_v5, %v849_v9  ;;  %v805_v15 = vadd.f32 %v804_v13, %v661_v6  ;;  %1775 = vmatpush3.bf16.msra.mxu0 %v1772_v7  ;;  %1800 = vmatpush3.bf16.msra.mxu1 %v1772_v7  ;;  %v55_v61 = vmul.f32 %v1927_v2, %v1927_v2  ;;  %v44_v62 = vmul.f32 0.5, %v1927_v2  ;;  %v1810_v5 = vpop.eup %1809 }
 0x1ff   :  { %v1776_v17 = vpack.c.bf16 %v866_v11, %v865_v14  ;;  %vm836_vm14 = vcmp.ge.f32.partialorder %v810_v12, 0.0  ;;  %v852_v18 = vmul.f32 0.01, %v810_v12  ;;  %v52_v63 = vmul.f32 %v51_v60, %v1927_v2  ;;  %v940_v60 = vpop.permute.xlu0 %939 }
 0x200   :  { %vm835_vm15 = vcmp.ge.f32.partialorder %v805_v15, 0.0  ;;  %v851_v20 = vmul.f32 0.01, %v805_v15  ;;  %v1658_v21 = vpop.f32.mrb[30].mxu1  ;;  %v56_v0 = vadd.f32 1.0, %v55_v61  ;;  %1811 = vtanh.f32 %v44_v62 }
 0x201   :  { %v868_v23 = vsel %vm836_vm14, %v810_v12, %v852_v18  ;;  %v820_v24 = vadd.f32 %v1658_v21, %v676_v19  ;;  %v814_v25 = vpop.f32.mrb[31].mxu1  ;;  %1777 = vmatprep.subr.bf16.mxu0 %v1776_v17  ;;  %1793 = vmatprep.subr.bf16.mxu1 %v1776_v17  ;;  %v53_v4 = vmul.f32 1.442695, %v52_v63  ;;  %v49_v6 = vadd.f32 1.0, %v1810_v5 }
 0x202   :  { %v867_v26 = vsel %vm835_vm15, %v805_v15, %v851_v20  ;;  %v815_v27 = vadd.f32 %v814_v25, %v671_v22  ;;  %1779 = vmatpush3.bf16.msra.mxu0 %v1776_v17  ;;  %1801 = vmatpush3.bf16.msra.mxu1 %v1776_v17  ;;  %1813 = vrcp.f32 %v56_v0  ;;  %v72_v8 = vstv %s1324_s6 }
 0x203   :  { %v1780_v28 = vpack.c.bf16 %v868_v23, %v867_v26  ;;  %vm838_vm0 = vcmp.ge.f32.partialorder %v820_v24, 0.0  ;;  %v854_v29 = vmul.f32 0.01, %v820_v24  ;;  %1815 = vpow2.f32 %v53_v4 }
 0x204   :  { %vm837_vm1 = vcmp.ge.f32.partialorder %v815_v27, 0.0  ;;  %v853_v30 = vmul.f32 0.01, %v815_v27  ;;  %v101_v10 = vstv %s2199_s13  ;;  %v50_v11 = vmul.f32 0.5, %v49_v6 }
 0x205   :  { %v870_v31 = vsel %vm838_vm0, %v820_v24, %v854_v29  ;;  %1781 = vmatprep.subr.bf16.mxu0 %v1780_v28  ;;  %1794 = vmatprep.subr.bf16.mxu1 %v1780_v28  ;;  %v131_v12 = vstv %s2201_s1  ;;  %v62_v13 = vstv %s2203_s3  ;;  %v160_v15 = vstv %s2205_s14 }
 0x206   :  { %v869_v32 = vsel %vm837_vm1, %v815_v27, %v853_v30  ;;  %1783 = vmatpush3.bf16.msra.mxu0 %v1780_v28  ;;  %1802 = vmatpush3.bf16.msra.mxu1 %v1780_v28  ;;  %v69_v18 = vstv %s2207_s15  ;;  %v91_v21 = vstv %s2209_s16  ;;  %v98_v22 = vstv %s2211_s17 }
 0x207   :  { %v1784_v33 = vpack.c.bf16 %v870_v31, %v869_v32  ;;  %v63_v24 = vmul.f32 %v62_v13, %v50_v11  ;;  %v121_v25 = vstv %s2213_s18  ;;  %v128_v26 = vstv %s2215_s0 }
 0x208   :  { %v150_v30 = vstv %s2217_s19  ;;  %v157_v31 = vstv %s2219_s20  ;;  %v59_v32 = vstv %s2221_s4  ;;  %v83_v5 = vstv %s2246_s23 }
 0x209   :  { %1785 = vmatprep.subr.bf16.mxu0 %v1784_v33  ;;  %1795 = vmatprep.subr.bf16.mxu1 %v1784_v33  ;;  %v112_v6 = vstv %s2248_s24  ;;  %v171_v13 = vstv %s1340_s26  ;;  %vm1279_vm7 = vcmask 57344  }
 0x20a   :  { %1787 = vmatpush3.bf16.msra.mxu0 %v1784_v33  ;;  %1803 = vmatpush3.bf16.msra.mxu1 %v1784_v33  ;;  %v1812_v2 = vpop.eup %1811  ;;  %v92_v33 = vmul.f32 %v91_v21, %v50_v11 }
 0x20b   :  { %v46_v9 = vadd.f32 1.0, %v1812_v2 }
 0x20c   :  { %v1814_v7 = vpop.eup %1813  ;;  %v94_v48 = vrot.slane %v92_v33, 1 }
 0x20d   :  { %1692 = vmatmul.mubr.f32.vlgmr.msra.gmra.mrb[0].mxu0 %v1425_v35  ;;  %1722 = vmatmul.mubr.f32.vlgmr.msra.gmra.mrb[32].mxu1 %v1465_v36  ;;  %v73_v14 = vmul.f32 %v1814_v7, %v72_v8  ;;  %v1816_v17 = vpop.eup %1815  ;;  %v102_v19 = vmul.f32 %v1814_v7, %v101_v10  ;;  %v47_v20 = vmul.f32 0.5, %v46_v9  ;;  %v132_v23 = vmul.f32 %v1814_v7, %v131_v12 }
 0x20e   :  { %1694 = vmatprep.mubr.f32.mxu0 %v1428_v37  ;;  %v161_v27 = vmul.f32 %v1814_v7, %v160_v15  ;;  %v70_v28 = vmul.f32 %v1816_v17, %v69_v18  ;;  %v99_v34 = vmul.f32 %v1816_v17, %v98_v22  ;;  %v88_v36 = vstv %s2223_s21 }
 0x20f   :  { %v75_v29 = vrot.slane %v73_v14, 1  ;;  %v104_v35 = vrot.slane %v102_v19, 1  ;;  %v122_v37 = vmul.f32 %v121_v25, %v50_v11  ;;  %v129_v38 = vmul.f32 %v1816_v17, %v128_v26 }
 0x210   :  { %v163_v42 = vrot.slane %v161_v27, 1  ;;  %v142_v9 = vstv %s1335_s25  ;;  %v1220_v25 = vlaneseq }
 0x211   :  { %1695 = vmatmul.mubr.f32.gmra.mrb[2].mxu0 %v1429_v39  ;;  %v134_v39 = vrot.slane %v132_v23, 1  ;;  %v77_v45 = vmin.f32 %v70_v28, %v75_v29  ;;  %v124_v51 = vrot.slane %v122_v37, 1 }
 0x212   :  { %1697 = vmatprep.mubr.f32.mxu0 %v1432_v40  ;;  %v2242_v40 = vpop.permute.xlu1 %944 }
 0x213   :  { %v79_v56 = vrot.slane %v77_v45, 2 }
 0x215   :  { %1698 = vmatmul.mubr.f32.gmra.mrb[4].mxu0 %v1433_v1  ;;  %v151_v1 = vmul.f32 %v150_v30, %v50_v11  ;;  %v950_v11 = vpop.permute.xlu0 %949 }
 0x216   :  { %1700 = vmatprep.mubr.f32.mxu0 %v1436_v3  ;;  %v158_v3 = vmul.f32 %v1816_v17, %v157_v31 }
 0x217   :  { %v153_v53 = vrot.slane %v151_v1, 1 }
 0x219   :  { %1701 = vmatmul.mubr.f32.gmra.mrb[6].mxu0 %v1437_v43  ;;  %v60_v43 = vmul.f32 %v59_v32, %v47_v20  ;;  %v965_v19 = vpop.permute.xlu0 %964 }
 0x21a   :  { %1703 = vmatprep.mubr.f32.mxu0 %v1440_v44  ;;  %v65_v44 = vrot.slane %v63_v24, 1 }
 0x21d   :  { %1704 = vmatmul.mubr.f32.gmra.mrb[8].mxu0 %v1441_v46  ;;  %v147_v46 = vstv %s2230_s22  ;;  %v985_v21 = vpop.permute.xlu0 %984 }
 0x21e   :  { %1706 = vmatprep.mubr.f32.mxu0 %v1444_v47  ;;  %v89_v47 = vmul.f32 %v88_v36, %v47_v20 }
 0x221   :  { %1707 = vmatmul.mubr.f32.gmra.mrb[10].mxu0 %v1445_v49  ;;  %v106_v49 = vmin.f32 %v99_v34, %v104_v35  ;;  %v1221_v35 = vshrl.u32 %v1220_v25, 7  ;;  %v970_v37 = vpop.permute.xlu0 %969 }
 0x222   :  { %1709 = vmatprep.mubr.f32.mxu0 %v1448_v50  ;;  %v119_v50 = vmul.f32 %v118_v41, %v47_v20 }
 0x224   :  { %v126_v61 = vmin.f32 %v119_v50, %v124_v51 }
 0x225   :  { %1710 = vmatmul.mubr.f32.gmra.mrb[12].mxu0 %v1449_v52  ;;  %v136_v52 = vmin.f32 %v129_v38, %v134_v39  ;;  %v975_v45 = vpop.permute.xlu0 %974 }
 0x226   :  { %1712 = vmatprep.mubr.f32.mxu0 %v1452_v16  ;;  %v148_v16 = vmul.f32 %v147_v46, %v47_v20 }
 0x227   :  { %v138_v62 = vrot.slane %v136_v52, 2 }
 0x228   :  { %v155_v63 = vmin.f32 %v148_v16, %v153_v53 }
 0x229   :  { %1713 = vmatmul.mubr.f32.gmra.mrb[14].mxu0 %v1453_v54  ;;  %v165_v54 = vmin.f32 %v158_v3, %v163_v42  ;;  %v140_v7 = vmin.f32 %v126_v61, %v138_v62  ;;  %v1222_v3 = vsub.s32 0, %v1221_v35  ;;  %v1020_v61 = vpop.permute.xlu0 %1019 }
 0x22a   :  { %1715 = vmatprep.mubr.f32.mxu0 %v1456_v55  ;;  %v67_v55 = vmin.f32 %v60_v43, %v65_v44 }
 0x22b   :  { %v167_v0 = vrot.slane %v165_v54, 2  ;;  %v143_v15 = vmul.f32 %v142_v9, %v140_v7 }
 0x22c   :  { %v81_v4 = vmin.f32 %v67_v55, %v79_v56 }
 0x22d   :  { %1716 = vmatmul.mubr.f32.gmra.mrb[16].mxu0 %v1457_v57  ;;  %v2250_v57 = vpop.permute.xlu1 %959  ;;  %v169_v10 = vmin.f32 %v155_v63, %v167_v0 }
 0x22e   :  { %1718 = vmatprep.mubr.f32.mxu0 %v1460_v58  ;;  %v96_v58 = vmin.f32 %v89_v47, %v94_v48  ;;  %v84_v12 = vmul.f32 %v83_v5, %v81_v4 }
 0x22f   :  { %v172_v17 = vmul.f32 %v171_v13, %v169_v10 }
 0x230   :  { %1817 = vtanh.f32 %v84_v12 }
 0x231   :  { %1719 = vmatmul.mubr.f32.gmra.mrb[18].mxu0 %v1461_v59  ;;  %v108_v59 = vrot.slane %v106_v49, 2  ;;  %v980_v8 = vpop.permute.xlu1 %979 }
 0x233   :  { %v110_v2 = vmin.f32 %v96_v58, %v108_v59 }
 0x235   :  { %v113_v14 = vmul.f32 %v112_v6, %v110_v2  ;;  %v955_v18 = vpop.permute.xlu1 %954 }
 0x237   :  { %1819 = vtanh.f32 %v113_v14 }
 0x238   :  { %1821 = vtanh.f32 %v143_v15 }
 0x239   :  { %1823 = vtanh.f32 %v172_v17  ;;  %v990_v20 = vpop.permute.xlu1 %989 }
 0x23a   :  { %v1818_v24 = vpop.eup %1817 }
 0x23b   :  { %v86_v33 = vmul.f32 %v1818_v24, %v84_v12 }
 0x23d   :  { %v995_v31 = vpop.permute.xlu1 %994 }
 0x241   :  { %v1820_v28 = vpop.eup %1819  ;;  %v2258_v43 = vpop.permute.xlu1 %1024 }
 0x242   :  { %v1822_v29 = vpop.eup %1821  ;;  %v115_v34 = vmul.f32 %v1820_v28, %v113_v14 }
 0x243   :  { %v1824_v30 = vpop.eup %1823  ;;  %v145_v38 = vmul.f32 %v1822_v29, %v143_v15 }
 0x244   :  { %v174_v39 = vmul.f32 %v1824_v30, %v172_v17  ;;  %v2256_v1 = vadd.f32 %v115_v34, %v86_v33 }
 0x245   :  { %v1005_v16 = vpop.permute.xlu1 %1004 }
 0x246   :  { %v2260_v44 = vadd.f32 %v174_v39, %v145_v38  ;;  %v1223_v48 = vrot.slane %v2256_v1, %v1222_v3 }
 0x248   :  { %v1235_v52 = vrot.slane %v2260_v44, %v1222_v3 }
 0x249   :  { %v1010_v13 = vpop.permute.xlu1 %1009 }
 0x24d   :  { %v1015_v34 = vpop.permute.xlu1 %1014 }
 0x2e0   :  { %v1693_v22 = vpop.f32.mrb[0].mxu0  ;;  %v1723_v23 = vpop.f32.mrb[32].mxu1 }
 0x2e1   :  { %v1112_v26 = vpop.f32.mrb[1].mxu0  ;;  %v2254_v27 = vpop.f32.mrb[33].mxu1  ;;  %v1118_v47 = vadd.f32 %v1693_v22, %v2242_v40 }
 0x2e2   :  { %v1113_v50 = vadd.f32 %v1112_v26, %v940_v60 }
 0x2e3   :  { %v1225_v55 = vmul.f32 %v1223_v48, %v1118_v47 }
 0x2e4   :  { %v1696_v32 = vpop.f32.mrb[2].mxu0  ;;  %v1224_v62 = vmul.f32 %v1223_v48, %v1113_v50 }
 0x2e5   :  { %v1122_v36 = vpop.f32.mrb[3].mxu0  ;;  %v1128_v56 = vadd.f32 %v1696_v32, %v955_v18 }
 0x2e6   :  { %v1123_v63 = vadd.f32 %v1122_v36, %v950_v11 }
 0x2e7   :  { %v1227_v9 = vmul.f32 %v1223_v48, %v1128_v56 }
 0x2e8   :  { %v1699_v41 = vpop.f32.mrb[4].mxu0  ;;  %v1226_v14 = vmul.f32 %v1223_v48, %v1123_v63 }
 0x2e9   :  { %v1132_v42 = vpop.f32.mrb[5].mxu0  ;;  %v1138_v51 = vadd.f32 %v1699_v41, %v965_v19 }
 0x2ea   :  { %v1133_v53 = vadd.f32 %v1132_v42, %v2250_v57 }
 0x2eb   :  { %v1237_v40 = vmul.f32 %v1235_v52, %v1138_v51 }
 0x2ec   :  { %v1702_v46 = vpop.f32.mrb[6].mxu0  ;;  %v1236_v2 = vmul.f32 %v1235_v52, %v1133_v53 }
 0x2ed   :  { %v1142_v49 = vpop.f32.mrb[7].mxu0  ;;  %v1148_v4 = vadd.f32 %v1702_v46, %v975_v45 }
 0x2ee   :  { %v1143_v60 = vadd.f32 %v1142_v49, %v970_v37 }
 0x2ef   :  { %v1239_v18 = vmul.f32 %v1235_v52, %v1148_v4 }
 0x2f0   :  { %v1705_v54 = vpop.f32.mrb[8].mxu0 }
 0x2f1   :  { %v1158_v58 = vadd.f32 %v1705_v54, %v985_v21  ;;  %v1152_v59 = vpop.f32.mrb[9].mxu0  ;;  %v1238_v21 = vmul.f32 %v1235_v52, %v1143_v60 }
 0x2f2   :  { %v1153_v0 = vadd.f32 %v1152_v59, %v980_v8  ;;  %v1000_v8 = vpop.permute.xlu0 %999 }
 0x2f3   :  { %v1229_v5 = vadd.f32 %v1225_v55, %v1158_v58 }
 0x2f4   :  { %v1228_v6 = vadd.f32 %v1224_v62, %v1153_v0  ;;  %v1708_v7 = vpop.f32.mrb[10].mxu0 }
 0x2f5   :  { %v1241_v10 = vadd.f32 %v1237_v40, %v1229_v5  ;;  %v1168_v12 = vadd.f32 %v1708_v7, %v995_v31  ;;  %v1162_v57 = vpop.f32.mrb[11].mxu0 }
 0x2f6   :  { %v1240_v15 = vadd.f32 %v1236_v2, %v1228_v6  ;;  %v1163_v17 = vadd.f32 %v1162_v57, %v990_v20  ;;  %v1030_v42 = vpop.permute.xlu0 %1029 }
 0x2f7   :  { %v1231_v19 = vadd.f32 %v1227_v9, %v1168_v12  ;;  %vm1245_vm2 = vcmp.ge.f32.partialorder %v1241_v10, 0.0  ;;  %v1249_v11 = vmul.f32 0.01, %v1241_v10 }
 0x2f8   :  { %v1230_v22 = vadd.f32 %v1226_v14, %v1163_v17  ;;  %v1711_v23 = vpop.f32.mrb[12].mxu0  ;;  %vm1244_vm3 = vcmp.ge.f32.partialorder %v1240_v15, 0.0  ;;  %v1248_v24 = vmul.f32 0.01, %v1240_v15 }
 0x2f9   :  { %v1243_v25 = vadd.f32 %v1239_v18, %v1231_v19  ;;  %v1178_v26 = vadd.f32 %v1711_v23, %v1005_v16  ;;  %v1253_v28 = vsel %vm1245_vm2, %v1241_v10, %v1249_v11  ;;  %v1172_v29 = vpop.f32.mrb[13].mxu0 }
 0x2fa   :  { %v1242_v30 = vadd.f32 %v1238_v21, %v1230_v22  ;;  %v1173_v31 = vadd.f32 %v1172_v29, %v1000_v8  ;;  %v1252_v32 = vsel %vm1244_vm3, %v1240_v15, %v1248_v24  ;;  %v1035_v58 = vpop.permute.xlu0 %1034  ;;  %v1276_v29 = vmul.f32 0.9, %v2256_v1 }
 0x2fb   :  { %v1257_v33 = vmul.f32 %v1253_v28, %v1178_v26  ;;  %vm1247_vm5 = vcmp.ge.f32.partialorder %v1243_v25, 0.0  ;;  %v1251_v20 = vmul.f32 0.01, %v1243_v25 }
 0x2fc   :  { %v1256_v35 = vmul.f32 %v1252_v32, %v1173_v31  ;;  %v1714_v36 = vpop.f32.mrb[14].mxu0  ;;  %vm1246_vm6 = vcmp.ge.f32.partialorder %v1242_v30, 0.0  ;;  %v1250_v37 = vmul.f32 0.01, %v1242_v30 }
 0x2fd   :  { %v1262_v38 = vsel %vm1260_vm4, %v1257_v33, 0.0  ;;  %v1188_v39 = vadd.f32 %v1714_v36, %v1015_v34  ;;  %v1255_v41 = vsel %vm1247_vm5, %v1243_v25, %v1251_v20  ;;  %v1182_v3 = vpop.f32.mrb[15].mxu0 }
 0x2fe   :  { %v1261_v45 = vsel %vm1260_vm4, %v1256_v35, 0.0  ;;  %v1183_v46 = vadd.f32 %v1182_v3, %v1010_v13  ;;  %v1254_v47 = vsel %vm1246_vm6, %v1242_v30, %v1250_v37  ;;  %v1040_v19 = vpop.permute.xlu0 %1039 }
 0x2ff   :  { %v1263_v48 = vadd.f32 %v1262_v38, %v1261_v45  ;;  %v1259_v49 = vmul.f32 %v1255_v41, %v1188_v39  ;;  %v1213_v11 = vadd.f32 %v2254_v27, %v1040_v19  ;;  %v1300_v27 = vmul.f32 0.9, %v2260_v44 }
 0x300   :  { %v1258_v50 = vmul.f32 %v1254_v47, %v1183_v46  ;;  %v1717_v51 = vpop.f32.mrb[16].mxu0 }
 0x301   :  { %v1198_v52 = vadd.f32 %v1717_v51, %v2258_v43  ;;  %v1192_v16 = vpop.f32.mrb[17].mxu0  ;;  %v1266_v59 = vsel %vm1260_vm4, %v1259_v49, 0.0 }
 0x302   :  { %v1264_v53 = vsel %vm1260_vm4, %v1258_v50, 0.0  ;;  %v1193_v54 = vadd.f32 %v1192_v16, %v1020_v61 }
 0x303   :  { %v1265_v55 = vadd.f32 %v1264_v53, %v1263_v48  ;;  %v1282_v56 = vmul.f32 %v1253_v28, %v1198_v52 }
 0x304   :  { %v1281_v62 = vmul.f32 %v1252_v32, %v1193_v54  ;;  %v1720_v63 = vpop.f32.mrb[18].mxu0 }
 0x305   :  { %v1267_v0 = vadd.f32 %v1266_v59, %v1265_v55  ;;  %v1286_v40 = vsel %vm1260_vm4, %v1282_v56, 0.0  ;;  %v1208_v4 = vadd.f32 %v1720_v63, %v1035_v58  ;;  %v1202_v5 = vpop.f32.mrb[19].mxu0 }
 0x306   :  { %v1285_v2 = vsel %vm1260_vm4, %v1281_v62, 0.0  ;;  %v1203_v60 = vadd.f32 %v1202_v5, %v1030_v42 }
 0x307   :  { %v1268_v43 = vrot.slane %v1267_v0, 4  ;;  %v1287_v6 = vadd.f32 %v1286_v40, %v1285_v2  ;;  %v1284_v7 = vmul.f32 %v1255_v41, %v1208_v4 }
 0x308   :  { %v1283_v9 = vmul.f32 %v1254_v47, %v1203_v60 }
 0x309   :  { %v1269_v61 = vadd.f32 %v1268_v43, %v1267_v0  ;;  %v1290_v13 = vsel %vm1260_vm4, %v1284_v7, 0.0 }
 0x30a   :  { %v1288_v10 = vsel %vm1260_vm4, %v1283_v9, 0.0 }
 0x30b   :  { %v1270_v12 = vrot.slane %v1269_v61, 2  ;;  %v1289_v57 = vadd.f32 %v1288_v10, %v1287_v6 }
 0x30d   :  { %v1271_v14 = vadd.f32 %v1270_v12, %v1269_v61  ;;  %v1291_v15 = vadd.f32 %v1290_v13, %v1289_v57 }
 0x30f   :  { %v1292_v17 = vrot.slane %v1291_v15, 4  ;;  %v1272_v18 = vrot.slane %v1271_v14, 1 }
 0x311   :  { %v1293_v8 = vadd.f32 %v1292_v17, %v1291_v15  ;;  %v1273_v21 = vadd.f32 %v1272_v18, %v1271_v14 }
 0x313   :  { %v1294_v22 = vrot.slane %v1293_v8, 2  ;;  %v1274_v23 = vadd.f32 %v1273_v21, %v1213_v11 }
 0x315   :  { %v1295_v24 = vadd.f32 %v1294_v22, %v1293_v8  ;;  %1825 = vtanh.f32 %v1274_v23 }
 0x317   :  { %v1296_v25 = vrot.slane %v1295_v24, 1 }
 0x319   :  { %v1297_v26 = vadd.f32 %v1296_v25, %v1295_v24 }
 0x31b   :  { %v1298_v28 = vadd.f32 %v1297_v26, %v1213_v11 }
 0x31d   :  { %1827 = vtanh.f32 %v1298_v28 }
 0x31f   :  { %v1826_v30 = vpop.eup %1825 }
 0x320   :  { %v1277_v31 = vmul.f32 0.1, %v1826_v30 }
 0x322   :  { %v1278_v32 = vadd.f32 %v1277_v31, %v1276_v29 }
 0x324   :  { %1280 = vst.msk [vmem:[#allocation5] sm:$0x1] %vm1279_vm7, %v1278_v32 }
 0x327   :  { %v1828_v33 = vpop.eup %1827 }
 0x328   :  { %v1301_v20 = vmul.f32 0.1, %v1828_v33 }
 0x32a   :  { %v1303_v34 = vrot.slane %v1301_v20, 1 }
 0x32c   :  { %v1305_v35 = vadd.f32 %v1303_v34, %v1300_v27 }
 0x32e   :  { %1306 = vst.msk [vmem:[#allocation5 + $0x1] sm:$0x1] %vm1279_vm7, %v1305_v35 }
 0x32f   :  { %1852 = shalt.err (!%p1849_p9)
}
 0x330   :  { %s1853_s9 = scalar_lea.hbm %s2298_s8, 32 }
 0x331   :  { %p1854_p10 = scmp.ne.s32.totalorder %s2298_s8, %s1853_s9  ;;  %p1857_p11 = scmp.lt.u32.totalorder %s1853_s9, %s2298_s8 }
 0x333   :  { %p1859_p12 = pnand %p1857_p11, %p1854_p10 }
 0x335   :  { %1862 = shalt.err (!%p1859_p12)
}
 0x336   :  { %1316 = dma.vmem_to_hbm [thread:$0]  %s1314_s28, 32, %s2298_s8, [#allocation3]  }
 0x337   :  { %1865 = dma.done.wait [#allocation3], 32  }
 0x338   :  { %1866 = vsyncadd [#allocation3], 4294967264 }
 0x339   :  { %1320 = vsyncpa [#allocation3], 1 }
 0x33a   :  { %1321 = vsyncpa [#allocation4], 1 }

</bundles_post_ra>
